<compile_context>
chip_gen: v5e
topology: v5e:2x2
jax: 0.10.0
libtpu: 0.0.40
codegen_flags: <defaults>
</compile_context>

<pallas_src>
import functools

import jax
import jax.numpy as jnp
from jax.experimental import pallas as pl
from jax.experimental.pallas import tpu as pltpu

LANE = 128  # TPU vreg lane width


def _round_up(n, m):
    return ((n + m - 1) // m) * m


def _pick_graphs_per_step(batch, n_nodes, target_rows=256):
    """Largest divisor G of `batch` such that G*N <= target_rows (one dense MXU
    pass of stacked rows) and batch//G >= 2 (>=2 grid steps -> DMA/compute
    pipelining and v7x megacore sharding of the 'parallel' batch axis)."""
    best = None
    for g in range(1, batch + 1):
        if batch % g:
            continue
        if batch > 1 and batch // g < 2:
            continue
        if g * n_nodes <= target_rows:
            best = g
    return best if best is not None else (1 if batch > 1 else batch)


# ---------------------------------------------------------------------------
# Fused kernel factory: block-diag A_hat + num_layers GCN layers + mean-pool +
# projector.  Refs: (adj, x, W0, b0, ..., W_{L-1}, b_{L-1}, Wp1, bp1, Wp2, bp2, z)
# ---------------------------------------------------------------------------
def _make_fused_simclr_kernel(num_layers, n_nodes, graphs_per_step, matmul_dtype):
    G, N = graphs_per_step, n_nodes
    GN = G * N

    def kernel(*refs):
        adj_ref, x_ref = refs[0], refs[1]
        gcn_refs = refs[2:2 + 2 * num_layers]
        w1_ref, b1_ref, w2_ref, b2_ref = refs[2 + 2 * num_layers:6 + 2 * num_layers]
        z_ref = refs[6 + 2 * num_layers]

        # ---- Build block-diagonal A_hat ONCE per grid step (reused by all layers)
        a = adj_ref[...].astype(jnp.float32)             # (G, N, N); degree math in f32
        a_rows = a.reshape(GN, N)                        # layout-free (N % 8 == 0)
        a_tiled = jnp.tile(a_rows, (1, G))               # (GN, GN): per-row graph repeated

        # block-id mask + identity, no vector integer division:
        # row_blk[r, c] = r // N via a 3-D iota + layout-free reshape; column ids
        # via a single square f32 XLU transpose.
        row_blk = jax.lax.broadcasted_iota(
            jnp.int32, (G, N, GN), 0).reshape(GN, GN).astype(jnp.float32)
        same_block = row_blk == row_blk.T                # (GN, GN) bool
        rid = jax.lax.broadcasted_iota(jnp.int32, (GN, GN), 0)
        cid = jax.lax.broadcasted_iota(jnp.int32, (GN, GN), 1)
        eye = (rid == cid).astype(jnp.float32)

        a_si = jnp.where(same_block, a_tiled, 0.0) + eye  # block-diag(A + I)
        deg = jnp.sum(a_si, axis=1, keepdims=True)        # (GN, 1), >= 1 (self loop)
        dinv = jax.lax.rsqrt(deg)                         # D^-1/2, f32
        dinv_cols = jnp.broadcast_to(dinv, (GN, GN)).T    # dinv[c] at position [r, c]
        # A_hat = D^-1/2 (A + I) D^-1/2, block-diagonal; a / a_tiled / deg / dinv
        # are dead after this point -> only a_hat stays live across the layers.
        a_hat = (dinv * a_si * dinv_cols).astype(matmul_dtype)

        # ---- GCN layers on the stacked (GN, F) activations: two dense MXU
        # matmuls per layer for the whole graph group (no per-graph tiny matmuls).
        h = x_ref[...].reshape(GN, -1)                    # (GN, Fin_pad), f32
        for l in range(num_layers):
            w = gcn_refs[2 * l][...].astype(matmul_dtype)
            b = gcn_refs[2 * l + 1][...]
            agg = jnp.dot(a_hat, h.astype(matmul_dtype),
                          preferred_element_type=jnp.float32)
            t = jnp.dot(agg.astype(matmul_dtype), w,
                        preferred_element_type=jnp.float32) + b
            h = jnp.maximum(t, 0.0)

        # ---- Global average pooling over nodes -> (G, E_pad)
        g_pool = jnp.mean(h.reshape(G, N, -1), axis=1)

        # ---- SimCLR projector: Linear -> ReLU -> Linear (lane-dense output)
        t = jnp.dot(g_pool.astype(matmul_dtype), w1_ref[...].astype(matmul_dtype),
                    preferred_element_type=jnp.float32) + b1_ref[...]
        t = jnp.maximum(t, 0.0)
        z = jnp.dot(t.astype(matmul_dtype), w2_ref[...].astype(matmul_dtype),
                    preferred_element_type=jnp.float32) + b2_ref[...]
        z_ref[...] = z.astype(z_ref.dtype)

    return kernel


# ---------------------------------------------------------------------------
# Wrapper: one pallas_call for the full forward pass.
# ---------------------------------------------------------------------------
@functools.partial(
    jax.jit, static_argnames=("proj_output_size", "graphs_per_step", "matmul_dtype"))
def simclr_forward(x, adj, padded_params, *, proj_output_size,
                   graphs_per_step=None, matmul_dtype=jnp.bfloat16):
    """x: [B,N,Fin] f32; adj: [B,N,N] 0/1 (f32 or bf16); padded_params from
    prepare_padded_params (weights [in_pad,out_pad], biases [1,out_pad])."""
    B, N, Fin = x.shape
    # TODO(synk): mask padded nodes in pooling to support N not a multiple of 8.
    assert N % 8 == 0, "N must be a multiple of 8 (sublane alignment)"

    gcn = padded_params["gcn"]
    (W1, b1), (W2, b2) = padded_params["proj"]
    L = len(gcn)
    Fin_p = gcn[0][0].shape[0]
    P_p = W2.shape[1]

    # Zero-pad node features to the lane-dense width (padded weight rows are
    # zero, so padded feature columns contribute nothing).
    if Fin_p != Fin:
        x = jnp.pad(x, ((0, 0), (0, 0), (0, Fin_p - Fin)))

    G = graphs_per_step if graphs_per_step is not None else _pick_graphs_per_step(B, N)
    assert B % G == 0
    grid = (B // G,)
    GN = G * N

    kernel = _make_fused_simclr_kernel(L, N, G, matmul_dtype)

    in_specs = [
        pl.BlockSpec((G, N, N), lambda g: (g, 0, 0)),       # adjacency tile
        pl.BlockSpec((G, N, Fin_p), lambda g: (g, 0, 0)),   # node-feature tile
    ]
    weight_inputs = []
    for W, b in list(gcn) + [(W1, b1), (W2, b2)]:
        weight_inputs += [W, b]
        # Grid-invariant weights (constant index map).  NOTE: could be marked
        # single-buffered (pl.Buffered(1)) to save VMEM at scale; footprint here
        # is tiny so the default buffering is kept.
        in_specs += [pl.BlockSpec(W.shape, lambda g: (0, 0)),
                     pl.BlockSpec(b.shape, lambda g: (0, 0))]

    # Advisory cost model so XLA can schedule/overlap the fused call.
    steps = B // G
    flops = 0
    for (W, _) in gcn:
        flops += 2 * GN * GN * W.shape[0] + 2 * GN * W.shape[0] * W.shape[1]
    flops += 2 * G * W1.shape[0] * W1.shape[1] + 2 * G * W2.shape[0] * W2.shape[1]
    flops *= steps
    bytes_accessed = (adj.size * adj.dtype.itemsize + x.size * x.dtype.itemsize
                      + sum(int(w.size) * w.dtype.itemsize for w in weight_inputs)
                      + B * P_p * x.dtype.itemsize)
    cost = pl.CostEstimate(flops=int(flops), transcendentals=int(B * N),
                           bytes_accessed=int(bytes_accessed))

    z_full = pl.pallas_call(
        kernel,
        out_shape=jax.ShapeDtypeStruct((B, P_p), x.dtype),
        grid_spec=pltpu.PrefetchScalarGridSpec(
            num_scalar_prefetch=0,
            grid=grid,
            in_specs=in_specs,
            out_specs=pl.BlockSpec((G, P_p), lambda g: (g, 0)),
        ),
        compiler_params=pltpu.CompilerParams(
            dimension_semantics=("parallel",),
            # Per-step footprint (double-buffered A/x tiles + ~0.4 MiB weights +
            # one (GN,GN) A_hat + small activations) is ~1-2 MiB here, far under
            # v7x's 64 MiB physical VMEM; 32 MiB scoped limit is safe everywhere.
            vmem_limit_bytes=32 * 1024 * 1024,
        ),
        cost_estimate=cost,
    )(adj, x, *weight_inputs)

    # Slice the lane-dense (B, 128) output back to the true projection width.
    return z_full[:, :proj_output_size]


# ---------------------------------------------------------------------------
# Parameter construction.  Weights stored PRE-TRANSPOSED as [in, out], biases
# as [1, out]; prepare_padded_params zero-pads to 128-lane widths so every
# in-kernel matmul operand and the output are lane-dense.
# ---------------------------------------------------------------------------
def init_simclr_params(key, gnn_input_size, embedding_size, num_layers,
                       hidden_size, proj_output_size):
    params = {"gcn": [], "proj": []}
    dims = [gnn_input_size] + [embedding_size] * num_layers
    for i in range(num_layers):
        key, kw, kb = jax.random.split(key, 3)
        fan_in, fan_out = dims[i], dims[i + 1]
        scale = 1.0 / jnp.sqrt(fan_in)
        W = jax.random.uniform(kw, (fan_in, fan_out), jnp.float32, -scale, scale)
        b = jax.random.uniform(kb, (1, fan_out), jnp.float32, -scale, scale)
        params["gcn"].append((W, b))
    for fan_in, fan_out in ((embedding_size, hidden_size),
                            (hidden_size, proj_output_size)):
        key, kw, kb = jax.random.split(key, 3)
        scale = 1.0 / jnp.sqrt(fan_in)
        W = jax.random.uniform(kw, (fan_in, fan_out), jnp.float32, -scale, scale)
        b = jax.random.uniform(kb, (1, fan_out), jnp.float32, -scale, scale)
        params["proj"].append((W, b))
    return params


def prepare_padded_params(params, lane=LANE):
    """Zero-pad weights to [in_pad, out_pad] and biases to [1, out_pad] (multiples
    of 128).  Padded rows/cols are zero so the math is unchanged."""
    def pad_w(w):
        i, o = w.shape
        return jnp.pad(w, ((0, _round_up(i, lane) - i), (0, _round_up(o, lane) - o)))

    def pad_b(b):
        o = b.shape[-1]
        return jnp.pad(b.reshape(1, o), ((0, 0), (0, _round_up(o, lane) - o)))

    return {
        "gcn": [(pad_w(W), pad_b(b)) for W, b in params["gcn"]],
        "proj": [(pad_w(W), pad_b(b)) for W, b in params["proj"]],
    }


# ---------------------------------------------------------------------------
# Pure-JAX reference (materializes per-graph A_hat explicitly).
# ---------------------------------------------------------------------------
def simclr_forward_ref(x, adj, params):
    adj = adj.astype(jnp.float32)
    B, N, _ = adj.shape
    a = adj + jnp.eye(N, dtype=jnp.float32)[None]
    deg = jnp.sum(a, axis=2, keepdims=True)
    dinv = 1.0 / jnp.sqrt(deg)
    a_hat = dinv * a * jnp.swapaxes(dinv, 1, 2)
    h = x
    for W, b in params["gcn"]:
        h = jnp.maximum(jnp.einsum("bij,bjf->bif", a_hat, h) @ W + b, 0.0)
    g = jnp.mean(h, axis=1)
    (W1, b1), (W2, b2) = params["proj"]
    t = jnp.maximum(g @ W1 + b1, 0.0)
    return t @ W2 + b2


if __name__ == "__main__":
    # Small, forward-consistent shapes: 16 graphs of 16 nodes -> G=8 graphs per
    # grid step (128 stacked rows per MXU pass), grid=(2,) "parallel" steps.
    B, N = 16, 16
    gnn_input_size = 8
    embedding_size = 32
    num_layers = 3
    hidden_size = 64
    proj_output_size = embedding_size // 2   # SimCLR default: embedding_size // 2

    key = jax.random.PRNGKey(0)
    key, kx, ka = jax.random.split(key, 3)

    x = jax.random.normal(kx, (B, N, gnn_input_size), jnp.float32)
    # symmetric 0/1 adjacency without self loops
    raw = jax.random.uniform(ka, (B, N, N))
    adj = (raw + jnp.swapaxes(raw, 1, 2) > 1.0).astype(jnp.float32)
    adj = adj * (1.0 - jnp.eye(N, dtype=jnp.float32)[None])
    # 0/1 adjacency is exact in bf16 -> halves the dominant HBM stream into the
    # kernel (int8 storage would work too on v5e/v6e; v7x would cast to bf16).
    adj_bf16 = adj.astype(jnp.bfloat16)

    params = init_simclr_params(key, gnn_input_size, embedding_size,
                                num_layers, hidden_size, proj_output_size)
    padded = prepare_padded_params(params)

    z_ref = simclr_forward_ref(x, adj, params)

    # f32 matmul path: tight numerical check.
    z_f32 = simclr_forward(x, adj, padded, proj_output_size=proj_output_size,
                           matmul_dtype=jnp.float32)
    jax.block_until_ready(z_f32)
    assert z_f32.shape == (B, proj_output_size)
    assert jnp.allclose(z_f32, z_ref, atol=1e-3, rtol=1e-3), "f32 mismatch vs reference"

    # bf16 matmul path (default per perf feedback): looser check.
    z_bf16 = simclr_forward(x, adj_bf16, padded, proj_output_size=proj_output_size,
                            matmul_dtype=jnp.bfloat16)
    jax.block_until_ready(z_bf16)
    assert z_bf16.shape == (B, proj_output_size)
    assert jnp.allclose(z_bf16, z_ref, atol=5e-2, rtol=5e-2), "bf16 mismatch vs reference"

    print("KERNEL_OK")
</pallas_src>

<mosaic_0001>
module attributes {stable_mosaic.version = 11 : i64} {
  func.func @kernel(%arg0: i32, %arg1: memref<8x16x16xf32, #tpu.memory_space<vmem>>, %arg2: memref<8x16x128xf32, #tpu.memory_space<vmem>>, %arg3: memref<128x128xf32, #tpu.memory_space<vmem>>, %arg4: memref<1x128xf32, #tpu.memory_space<vmem>>, %arg5: memref<128x128xf32, #tpu.memory_space<vmem>>, %arg6: memref<1x128xf32, #tpu.memory_space<vmem>>, %arg7: memref<128x128xf32, #tpu.memory_space<vmem>>, %arg8: memref<1x128xf32, #tpu.memory_space<vmem>>, %arg9: memref<128x128xf32, #tpu.memory_space<vmem>>, %arg10: memref<1x128xf32, #tpu.memory_space<vmem>>, %arg11: memref<128x128xf32, #tpu.memory_space<vmem>>, %arg12: memref<1x128xf32, #tpu.memory_space<vmem>>, %arg13: memref<8x128xf32, #tpu.memory_space<vmem>>) attributes {dimension_semantics = [#tpu.dimension_semantics<parallel>], iteration_bounds = array<i64: 2>, scalar_prefetch = 0 : i64, scratch_operands = 0 : i64, tpu.core_type = #tpu.core_type<tc>, window_params = [{transform_indices = @transform_0, window_bounds = array<i64: 8, 16, 16>}, {transform_indices = @transform_1, window_bounds = array<i64: 8, 16, 128>}, {pipeline_mode = #tpu.pipeline_mode<synchronous>, transform_indices = @transform_2, window_bounds = array<i64: 128, 128>}, {pipeline_mode = #tpu.pipeline_mode<synchronous>, transform_indices = @transform_3, window_bounds = array<i64: 1, 128>}, {pipeline_mode = #tpu.pipeline_mode<synchronous>, transform_indices = @transform_4, window_bounds = array<i64: 128, 128>}, {pipeline_mode = #tpu.pipeline_mode<synchronous>, transform_indices = @transform_5, window_bounds = array<i64: 1, 128>}, {pipeline_mode = #tpu.pipeline_mode<synchronous>, transform_indices = @transform_6, window_bounds = array<i64: 128, 128>}, {pipeline_mode = #tpu.pipeline_mode<synchronous>, transform_indices = @transform_7, window_bounds = array<i64: 1, 128>}, {pipeline_mode = #tpu.pipeline_mode<synchronous>, transform_indices = @transform_8, window_bounds = array<i64: 128, 128>}, {pipeline_mode = #tpu.pipeline_mode<synchronous>, transform_indices = @transform_9, window_bounds = array<i64: 1, 128>}, {pipeline_mode = #tpu.pipeline_mode<synchronous>, transform_indices = @transform_10, window_bounds = array<i64: 128, 128>}, {pipeline_mode = #tpu.pipeline_mode<synchronous>, transform_indices = @transform_11, window_bounds = array<i64: 1, 128>}, {transform_indices = @transform_12, window_bounds = array<i64: 8, 128>}]} {
    %c0 = arith.constant 0 : index
    %c0_0 = arith.constant 0 : index
    %c0_1 = arith.constant 0 : index
    %0 = vector.load %arg1[%c0, %c0_0, %c0_1] : memref<8x16x16xf32, #tpu.memory_space<vmem>>, vector<8x16x16xf32>
    %1 = vector.shape_cast %0 : vector<8x16x16xf32> to vector<128x16xf32>
    %2 = tpu.concatenate %1, %1, %1, %1, %1, %1, %1, %1 in 1 : vector<128x16xf32>, vector<128x16xf32>, vector<128x16xf32>, vector<128x16xf32>, vector<128x16xf32>, vector<128x16xf32>, vector<128x16xf32>, vector<128x16xf32> -> vector<128x128xf32>
    %3 = tpu.iota {dimensions = array<i32: 0>} : vector<8x16x128xi32>
    %4 = vector.shape_cast %3 : vector<8x16x128xi32> to vector<128x128xi32>
    %5 = arith.sitofp %4 : vector<128x128xi32> to vector<128x128xf32>
    %6 = tpu.transpose %5, [1, 0] : vector<128x128xf32> -> vector<128x128xf32>
    %7 = arith.cmpf oeq, %5, %6 : vector<128x128xf32>
    %8 = tpu.iota {dimensions = array<i32: 0>} : vector<128x128xi32>
    %9 = tpu.iota {dimensions = array<i32: 1>} : vector<128x128xi32>
    %10 = arith.cmpi eq, %8, %9 : vector<128x128xi32>
    %11 = arith.extui %10 : vector<128x128xi1> to vector<128x128xi32>
    %12 = arith.sitofp %11 : vector<128x128xi32> to vector<128x128xf32>
    %cst = arith.constant 0.000000e+00 : f32
    %13 = vector.broadcast %cst : f32 to vector<128x128xf32>
    %14 = arith.select %7, %2, %13 : vector<128x128xi1>, vector<128x128xf32>
    %15 = arith.addf %14, %12 : vector<128x128xf32>
    %cst_2 = arith.constant dense<0.000000e+00> : vector<128xf32>
    %16 = vector.multi_reduction <add>, %15, %cst_2 [1] : vector<128x128xf32> to vector<128xf32>
    %17 = vector.shape_cast %16 : vector<128xf32> to vector<128x1xf32>
    %18 = math.rsqrt %17 : vector<128x1xf32>
    %19 = vector.shape_cast %18 : vector<128x1xf32> to vector<128x1xf32>
    %20 = vector.broadcast %19 : vector<128x1xf32> to vector<128x128xf32>
    %21 = tpu.transpose %20, [1, 0] : vector<128x128xf32> -> vector<128x128xf32>
    %22 = vector.broadcast %18 : vector<128x1xf32> to vector<128x128xf32>
    %23 = arith.mulf %22, %15 : vector<128x128xf32>
    %24 = arith.mulf %23, %21 : vector<128x128xf32>
    %c0_3 = arith.constant 0 : index
    %c0_4 = arith.constant 0 : index
    %c0_5 = arith.constant 0 : index
    %25 = vector.load %arg2[%c0_3, %c0_4, %c0_5] : memref<8x16x128xf32, #tpu.memory_space<vmem>>, vector<8x16x128xf32>
    %26 = vector.shape_cast %25 : vector<8x16x128xf32> to vector<128x128xf32>
    %c0_6 = arith.constant 0 : index
    %c0_7 = arith.constant 0 : index
    %27 = vector.load %arg3[%c0_6, %c0_7] : memref<128x128xf32, #tpu.memory_space<vmem>>, vector<128x128xf32>
    %c0_8 = arith.constant 0 : index
    %c0_9 = arith.constant 0 : index
    %28 = vector.load %arg4[%c0_8, %c0_9] : memref<1x128xf32, #tpu.memory_space<vmem>>, vector<1x128xf32>
    %cst_10 = arith.constant dense<0.000000e+00> : vector<128x128xf32>
    %29 = tpu.matmul %24, %26, %cst_10 {dimension_numbers = #tpu.dot_dimension_numbers<[1], [0], [0], [1], [0, 0, 1, 1], [], []>} : vector<128x128xf32>, vector<128x128xf32>, vector<128x128xf32> -> vector<128x128xf32>
    %cst_11 = arith.constant dense<0.000000e+00> : vector<128x128xf32>
    %30 = tpu.matmul %29, %27, %cst_11 {dimension_numbers = #tpu.dot_dimension_numbers<[1], [0], [0], [1], [0, 0, 1, 1], [], []>} : vector<128x128xf32>, vector<128x128xf32>, vector<128x128xf32> -> vector<128x128xf32>
    %31 = vector.broadcast %28 : vector<1x128xf32> to vector<128x128xf32>
    %32 = arith.addf %30, %31 : vector<128x128xf32>
    %cst_12 = arith.constant 0.000000e+00 : f32
    %33 = vector.broadcast %cst_12 : f32 to vector<128x128xf32>
    %34 = arith.maximumf %32, %33 : vector<128x128xf32>
    %c0_13 = arith.constant 0 : index
    %c0_14 = arith.constant 0 : index
    %35 = vector.load %arg5[%c0_13, %c0_14] : memref<128x128xf32, #tpu.memory_space<vmem>>, vector<128x128xf32>
    %c0_15 = arith.constant 0 : index
    %c0_16 = arith.constant 0 : index
    %36 = vector.load %arg6[%c0_15, %c0_16] : memref<1x128xf32, #tpu.memory_space<vmem>>, vector<1x128xf32>
    %cst_17 = arith.constant dense<0.000000e+00> : vector<128x128xf32>
    %37 = tpu.matmul %24, %34, %cst_17 {dimension_numbers = #tpu.dot_dimension_numbers<[1], [0], [0], [1], [0, 0, 1, 1], [], []>} : vector<128x128xf32>, vector<128x128xf32>, vector<128x128xf32> -> vector<128x128xf32>
    %cst_18 = arith.constant dense<0.000000e+00> : vector<128x128xf32>
    %38 = tpu.matmul %37, %35, %cst_18 {dimension_numbers = #tpu.dot_dimension_numbers<[1], [0], [0], [1], [0, 0, 1, 1], [], []>} : vector<128x128xf32>, vector<128x128xf32>, vector<128x128xf32> -> vector<128x128xf32>
    %39 = vector.broadcast %36 : vector<1x128xf32> to vector<128x128xf32>
    %40 = arith.addf %38, %39 : vector<128x128xf32>
    %cst_19 = arith.constant 0.000000e+00 : f32
    %41 = vector.broadcast %cst_19 : f32 to vector<128x128xf32>
    %42 = arith.maximumf %40, %41 : vector<128x128xf32>
    %c0_20 = arith.constant 0 : index
    %c0_21 = arith.constant 0 : index
    %43 = vector.load %arg7[%c0_20, %c0_21] : memref<128x128xf32, #tpu.memory_space<vmem>>, vector<128x128xf32>
    %c0_22 = arith.constant 0 : index
    %c0_23 = arith.constant 0 : index
    %44 = vector.load %arg8[%c0_22, %c0_23] : memref<1x128xf32, #tpu.memory_space<vmem>>, vector<1x128xf32>
    %cst_24 = arith.constant dense<0.000000e+00> : vector<128x128xf32>
    %45 = tpu.matmul %24, %42, %cst_24 {dimension_numbers = #tpu.dot_dimension_numbers<[1], [0], [0], [1], [0, 0, 1, 1], [], []>} : vector<128x128xf32>, vector<128x128xf32>, vector<128x128xf32> -> vector<128x128xf32>
    %cst_25 = arith.constant dense<0.000000e+00> : vector<128x128xf32>
    %46 = tpu.matmul %45, %43, %cst_25 {dimension_numbers = #tpu.dot_dimension_numbers<[1], [0], [0], [1], [0, 0, 1, 1], [], []>} : vector<128x128xf32>, vector<128x128xf32>, vector<128x128xf32> -> vector<128x128xf32>
    %47 = vector.broadcast %44 : vector<1x128xf32> to vector<128x128xf32>
    %48 = arith.addf %46, %47 : vector<128x128xf32>
    %cst_26 = arith.constant 0.000000e+00 : f32
    %49 = vector.broadcast %cst_26 : f32 to vector<128x128xf32>
    %50 = arith.maximumf %48, %49 : vector<128x128xf32>
    %51 = vector.shape_cast %50 : vector<128x128xf32> to vector<8x16x128xf32>
    %cst_27 = arith.constant dense<0.000000e+00> : vector<8x128xf32>
    %52 = vector.multi_reduction <add>, %51, %cst_27 [1] : vector<8x16x128xf32> to vector<8x128xf32>
    %cst_28 = arith.constant 1.600000e+01 : f32
    %53 = vector.broadcast %cst_28 : f32 to vector<8x128xf32>
    %54 = arith.divf %52, %53 : vector<8x128xf32>
    %c0_29 = arith.constant 0 : index
    %c0_30 = arith.constant 0 : index
    %55 = vector.load %arg9[%c0_29, %c0_30] : memref<128x128xf32, #tpu.memory_space<vmem>>, vector<128x128xf32>
    %cst_31 = arith.constant dense<0.000000e+00> : vector<8x128xf32>
    %56 = tpu.matmul %54, %55, %cst_31 {dimension_numbers = #tpu.dot_dimension_numbers<[1], [0], [0], [1], [0, 0, 1, 1], [], []>} : vector<8x128xf32>, vector<128x128xf32>, vector<8x128xf32> -> vector<8x128xf32>
    %c0_32 = arith.constant 0 : index
    %c0_33 = arith.constant 0 : index
    %57 = vector.load %arg10[%c0_32, %c0_33] : memref<1x128xf32, #tpu.memory_space<vmem>>, vector<1x128xf32>
    %58 = vector.broadcast %57 : vector<1x128xf32> to vector<8x128xf32>
    %59 = arith.addf %56, %58 : vector<8x128xf32>
    %cst_34 = arith.constant 0.000000e+00 : f32
    %60 = vector.broadcast %cst_34 : f32 to vector<8x128xf32>
    %61 = arith.maximumf %59, %60 : vector<8x128xf32>
    %c0_35 = arith.constant 0 : index
    %c0_36 = arith.constant 0 : index
    %62 = vector.load %arg11[%c0_35, %c0_36] : memref<128x128xf32, #tpu.memory_space<vmem>>, vector<128x128xf32>
    %cst_37 = arith.constant dense<0.000000e+00> : vector<8x128xf32>
    %63 = tpu.matmul %61, %62, %cst_37 {dimension_numbers = #tpu.dot_dimension_numbers<[1], [0], [0], [1], [0, 0, 1, 1], [], []>} : vector<8x128xf32>, vector<128x128xf32>, vector<8x128xf32> -> vector<8x128xf32>
    %c0_38 = arith.constant 0 : index
    %c0_39 = arith.constant 0 : index
    %64 = vector.load %arg12[%c0_38, %c0_39] : memref<1x128xf32, #tpu.memory_space<vmem>>, vector<1x128xf32>
    %65 = vector.broadcast %64 : vector<1x128xf32> to vector<8x128xf32>
    %66 = arith.addf %63, %65 : vector<8x128xf32>
    %c0_40 = arith.constant 0 : index
    %c0_41 = arith.constant 0 : index
    %67 = vector.load %arg13[%c0_40, %c0_41] : memref<8x128xf32, #tpu.memory_space<vmem>>, vector<8x128xf32>
    tpu.vector_store %arg13[%c0_40, %c0_41], %66 {strides = array<i32>} : memref<8x128xf32, #tpu.memory_space<vmem>>, vector<8x128xf32>,
    return
  }
  func.func @transform_0(%arg0: i32) -> (i32, i32, i32) {
    %c0_i32 = arith.constant 0 : i32
    %c0_i32_0 = arith.constant 0 : i32
    %c0_i32_1 = arith.constant 0 : i32
    return %arg0, %c0_i32, %c0_i32_0 : i32, i32, i32
  }
  func.func @transform_1(%arg0: i32) -> (i32, i32, i32) {
    %c0_i32 = arith.constant 0 : i32
    %c0_i32_0 = arith.constant 0 : i32
    %c0_i32_1 = arith.constant 0 : i32
    return %arg0, %c0_i32, %c0_i32_0 : i32, i32, i32
  }
  func.func @transform_2(%arg0: i32) -> (i32, i32) {
    %c0_i32 = arith.constant 0 : i32
    %c0_i32_0 = arith.constant 0 : i32
    %c0_i32_1 = arith.constant 0 : i32
    return %c0_i32, %c0_i32_0 : i32, i32
  }
  func.func @transform_3(%arg0: i32) -> (i32, i32) {
    %c0_i32 = arith.constant 0 : i32
    %c0_i32_0 = arith.constant 0 : i32
    %c0_i32_1 = arith.constant 0 : i32
    return %c0_i32, %c0_i32_0 : i32, i32
  }
  func.func @transform_4(%arg0: i32) -> (i32, i32) {
    %c0_i32 = arith.constant 0 : i32
    %c0_i32_0 = arith.constant 0 : i32
    %c0_i32_1 = arith.constant 0 : i32
    return %c0_i32, %c0_i32_0 : i32, i32
  }
  func.func @transform_5(%arg0: i32) -> (i32, i32) {
    %c0_i32 = arith.constant 0 : i32
    %c0_i32_0 = arith.constant 0 : i32
    %c0_i32_1 = arith.constant 0 : i32
    return %c0_i32, %c0_i32_0 : i32, i32
  }
  func.func @transform_6(%arg0: i32) -> (i32, i32) {
    %c0_i32 = arith.constant 0 : i32
    %c0_i32_0 = arith.constant 0 : i32
    %c0_i32_1 = arith.constant 0 : i32
    return %c0_i32, %c0_i32_0 : i32, i32
  }
  func.func @transform_7(%arg0: i32) -> (i32, i32) {
    %c0_i32 = arith.constant 0 : i32
    %c0_i32_0 = arith.constant 0 : i32
    %c0_i32_1 = arith.constant 0 : i32
    return %c0_i32, %c0_i32_0 : i32, i32
  }
  func.func @transform_8(%arg0: i32) -> (i32, i32) {
    %c0_i32 = arith.constant 0 : i32
    %c0_i32_0 = arith.constant 0 : i32
    %c0_i32_1 = arith.constant 0 : i32
    return %c0_i32, %c0_i32_0 : i32, i32
  }
  func.func @transform_9(%arg0: i32) -> (i32, i32) {
    %c0_i32 = arith.constant 0 : i32
    %c0_i32_0 = arith.constant 0 : i32
    %c0_i32_1 = arith.constant 0 : i32
    return %c0_i32, %c0_i32_0 : i32, i32
  }
  func.func @transform_10(%arg0: i32) -> (i32, i32) {
    %c0_i32 = arith.constant 0 : i32
    %c0_i32_0 = arith.constant 0 : i32
    %c0_i32_1 = arith.constant 0 : i32
    return %c0_i32, %c0_i32_0 : i32, i32
  }
  func.func @transform_11(%arg0: i32) -> (i32, i32) {
    %c0_i32 = arith.constant 0 : i32
    %c0_i32_0 = arith.constant 0 : i32
    %c0_i32_1 = arith.constant 0 : i32
    return %c0_i32, %c0_i32_0 : i32, i32
  }
  func.func @transform_12(%arg0: i32) -> (i32, i32) {
    %c0_i32 = arith.constant 0 : i32
    %c0_i32_0 = arith.constant 0 : i32
    return %arg0, %c0_i32 : i32, i32
  }
}

</mosaic_0001>

<bundles_post_ra>
// kernel: simclr_forward.1
= control target key start
LH: loop header
LB: loop body
LE: loop exit
PB: predicated region body
PF: predicated region fallthrough
CT: control target
= control target key end

     0   :  { %s3810_s0 = inlined_call_operand.vmem [shape: f32[16,16,16], index: 0, kind: input, shape index: {}]   ;;  %s3811_s1 = inlined_call_operand.vmem [shape: f32[16,16,128], index: 1, kind: input, shape index: {}]   ;;  %s3812_s2 = inlined_call_operand.vmem [shape: f32[128,128], index: 2, kind: input, shape index: {}]   ;;  %s3813_s3 = inlined_call_operand.vmem [shape: f32[1,128], index: 3, kind: input, shape index: {}]   ;;  %s3814_s4 = inlined_call_operand.vmem [shape: f32[128,128], index: 4, kind: input, shape index: {}]   ;;  %s3815_s5 = inlined_call_operand.hbm [shape: f32[1,128], index: 5, kind: input, shape index: {}]   ;;  %s3816_s6 = inlined_call_operand.vmem [shape: f32[128,128], index: 6, kind: input, shape index: {}]   ;;  %s3817_s7 = inlined_call_operand.hbm [shape: f32[1,128], index: 7, kind: input, shape index: {}]   ;;  %s3818_s8 = inlined_call_operand.vmem [shape: f32[128,128], index: 8, kind: input, shape index: {}]   ;;  %s3819_s9 = inlined_call_operand.hbm [shape: f32[1,128], index: 9, kind: input, shape index: {}]   ;;  %s3820_s10 = inlined_call_operand.vmem [shape: f32[128,128], index: 10, kind: input, shape index: {}]   ;;  %s3821_s11 = inlined_call_operand.vmem [shape: f32[1,128], index: 11, kind: input, shape index: {}]   ;;  %s3822_s12 = inlined_call_operand.hbm [shape: f32[16,128], index: 12, kind: output, shape index: {}]  }
   0x1   :  { %3826 = sst [smem:[#allocation15_spill]] %s3817_s7 }
   0x2   :  { %17 = vsyncpa [#allocation3], 0 }
   0x3   :  { %18 = vsyncpa [#allocation6], 0 }
   0x4   :  { %19 = vsyncpa [#allocation4], 0 }
   0x5   :  { %21 = vsyncpa [#allocation4 + $0x1], 0  ;;  %s2650_s21 = smov 0   ;;  %s2652_s22 = smov 0  }
   0x6   :  { %s2654_s23 = smov 0   ;;  %s2656_s24 = smov 0  }
   0x7 LB: > { %3827 = sst [smem:[#allocation12_spill]] %s2560_s23  ;;  %s2671_s25 = sadd.s32 4294967295, %s2564_s24   ;;  %s2564_s24 = sphi %s2656_s24, %s3834_s24   ;;  %s2560_s23 = sphi %s2654_s23, %s3836_s23   ;;  %s2556_s22 = sphi %s2652_s22, %s3838_s22   ;;  %s2552_s21 = sphi %s2650_s21, %s3837_s21  }
   0x8   : > { %s2192_s26 = sadd.s32 4294967294, %s2564_s24   ;;  %s2675_s27 = sadd.s32 1, %s2564_s24  }
   0x9   : > { %3828 = sst [smem:[#allocation13_spill]] %s2675_s27  ;;  %s296_s28 = sadd.s32 1, %s2560_s23 }
   0xa   : > { %s293_s29 = ssub.s32 %s2564_s24, %s2675_s27  ;;  %p306_p0 = scmp.ne.s32.totalorder %s2560_s23, %s2556_s22 }
   0xb   : > { %p294_p1 = scmp.eq.s32.totalorder %s293_s29, 0  ;;  %p307_p2 = scmp.eq.s32.totalorder %s2671_s25, 1 }
   0xc   : > { %p312_p3 = scmp.ne.s32.totalorder %s2556_s22, %s2552_s21  ;;  %p313_p4 = scmp.eq.s32.totalorder %s2192_s26, 1 }
   0xd   : > { %s2686_s30 = scalar_select %p294_p1, %s2560_s23, %s296_s28  }
   0xe   : > { %p2688_p5 = por %p307_p2, %p306_p0  ;;  %p2692_p6 = por %p313_p4, %p312_p3 }
   0xf   : > { %3829 = sst [smem:[#allocation14_spill]] %s2686_s30  ;;  %p2193_p7 = scmp.ge.s32.totalorder %s2564_s24, 1 }
  0x10   : > { %p320_p8 = scmp.lt.s32.totalorder %s2564_s24, 3  ;;  %p2307_p9 = scmp.eq.s32.totalorder %s2671_s25, 0 }
  0x11   : > { %s3833_s7 = sld [smem:[#allocation15_spill]]  ;;  %s2566_s19 = smov [#allocation5]  }
  0x12   : > { %p2699_p10 = pnand %p2193_p7, %p320_p8  ;;  %s358_s20 = sshll.u32 %s2566_s19, 4  ;;  %s359_s20 = int_to_ptr.vmem [resolvable:$true] %s358_s20 }
  0x13   : > { %s341_s29 = sshll.u32 %s3815_s5, 4  ;;  %s371_s27 = sshll.u32 %s3819_s9, 4  ;;  %s342_s29 = int_to_ptr.hbm [resolvable:$true] %s341_s29  ;;  %s372_s27 = int_to_ptr.hbm [resolvable:$true] %s371_s27 }
  0x14   : > { %p2293_p11 = pneg %p2699_p10  ;;  %s2567_s16 = smov [#allocation2]  }
  0x15   : > { %s343_s17 = sshll.u32 %s2567_s16, 4  ;;  %s344_s17 = int_to_ptr.vmem [resolvable:$true] %s343_s17 }
  0x16   : > { %p2294_p12 = pnand %p2307_p9, %p2293_p11 }
  0x17   : > { %s356_s18 = sshll.u32 %s3833_s7, 4  ;;  %s2568_s7 = smov [#allocation7]   ;;  %s357_s18 = int_to_ptr.hbm [resolvable:$true] %s356_s18 }
  0x18   : > { %2299 = dma.hbm_to_vmem [thread:$0]  (!%p2294_p12), %s357_s18, 16, %s359_s20, [#allocation6]  }
  0x19   : > { %2296 = dma.hbm_to_vmem [thread:$0]  (!%p2294_p12), %s342_s29, 16, %s344_s17, [#allocation3]  }
  0x1a   : > { %s373_s19 = sshll.u32 %s2568_s7, 4  ;;  %412 = sbr.rel (%p2699_p10) target bundleno = 2250 (0x8ca), region = 68  ;;  %s374_s19 = int_to_ptr.vmem [resolvable:$true] %s373_s19 }
  0x1b   : > { %2302 = dma.hbm_to_vmem [thread:$0]  (!%p2294_p12), %s372_s27, 16, %s374_s19, [#allocation6]  }
  0x1f   : > { %2539 = dma.done.wait (%p2307_p9), [#allocation3], 16  }
  0x20   : > { %2541 = vsyncadd (%p2307_p9), [#allocation3], 4294967280 }
  0x21   : > { %2543 = dma.done.wait (%p2307_p9), [#allocation6], 32  }
  0x22   : > { %2545 = vsyncadd (%p2307_p9), [#allocation6], 4294967264  ;;  %s2727_s23 = sshll.u32 %s2671_s25, 3  ;;  %s2569_s25 = smov 64   ;;  %vm854_vm0 = vcmask 130048   ;;  %vm871_vm1 = vcmask 261120  }
  0x23   : > { %p473_p13 = scmp.lt.s32.totalorder %s2727_s23, 15  ;;  %s2570_s20 = smov 48   ;;  %vm888_vm2 = vcmask 392192   ;;  %vm905_vm3 = vcmask 523264   ;;  %vm922_vm4 = vcmask 654336   ;;  %vm939_vm5 = vcmask 785408  }
  0x24   : > { %s2571_s26 = smov 16   ;;  %s2572_s28 = smov 32   ;;  %vm956_vm6 = vcmask 916480  }
  0x25   : > { %s2731_s7 = scalar_select %p473_p13, %s2727_s23, 15 }
  0x26   : > { %s2573_s29 = smov 96   ;;  %s2574_s16 = smov 80  }
  0x27   : > { %s2245_s27 = sshll.u32 %s2731_s7, 4  ;;  %s2575_s17 = smov 112  }
  0x28   : > { %s2739_s18 = scalar_lea.vmem %s3810_s0, %s2245_s27  ;;  %s3359_s15 = scalar_lea.vmem %s3811_s1, %s2245_s27 }
  0x29   : > { %v2742_v0 = vld [vmem:[%s2739_s18] sm:$0xff]  ;;  %v2751_v1 = vld [vmem:[%s2739_s18 + $0x8] sm:$0xff]  ;;  %v2766_v2 = vld [vmem:[%s2739_s18 + $0x10] sm:$0xff]  ;;  %s2085_s19 = scalar_lea.hbm %s3822_s12, %s2727_s23 }
  0x2a   : > { %662 = vrot.lane.b32.xlu2 %v2742_v0, %s2569_s25  ;;  %614 = vrot.lane.b32.xlu1 %v2742_v0, %s2570_s20  ;;  %v2781_v3 = vld [vmem:[%s2739_s18 + $0x18] sm:$0xff]  ;;  %v2796_v4 = vld [vmem:[%s2739_s18 + $0x20] sm:$0xff] }
  0x2b   : > { %518 = vrot.lane.b32.xlu0 %v2742_v0, %s2571_s26  ;;  %v2817_v5 = vld [vmem:[%s2739_s18 + $0x28] sm:$0xff]  ;;  %v2832_v7 = vld [vmem:[%s2739_s18 + $0x30] sm:$0xff]  ;;  %v2847_v10 = vld [vmem:[%s2739_s18 + $0x38] sm:$0xff] }
  0x2c   : > { %v2877_v27 = vld [vmem:[%s2739_s18 + $0x40] sm:$0xff]  ;;  %v2903_v42 = vld [vmem:[%s2739_s18 + $0x48] sm:$0xff]  ;;  %v2936_v62 = vld [vmem:[%s2739_s18 + $0x50] sm:$0xff] }
  0x32   : > { %568 = vrot.lane.b32.xlu2 %v2751_v1, %s2572_s28  ;;  %520 = vrot.lane.b32.xlu1 %v2751_v1, %s2571_s26 }
  0x33   : > { %566 = vrot.lane.b32.xlu0 %v2742_v0, %s2572_s28 }
  0x3a   : > { %758 = vrot.lane.b32.xlu2 %v2742_v0, %s2573_s29  ;;  %616 = vrot.lane.b32.xlu1 %v2751_v1, %s2570_s20 }
  0x3b   : > { %710 = vrot.lane.b32.xlu0 %v2742_v0, %s2574_s16 }
  0x42   : > { %806 = vrot.lane.b32.xlu2 %v2742_v0, %s2575_s17  ;;  %664 = vrot.lane.b32.xlu1 %v2751_v1, %s2569_s25 }
  0x43   : > { %522 = vrot.lane.b32.xlu0 %v2766_v2, %s2571_s26 }
  0x4a   : > { %618 = vrot.lane.b32.xlu2 %v2766_v2, %s2570_s20  ;;  %712 = vrot.lane.b32.xlu1 %v2751_v1, %s2574_s16 }
  0x4b   : > { %570 = vrot.lane.b32.xlu0 %v2766_v2, %s2572_s28 }
  0x52   : > { %666 = vrot.lane.b32.xlu2 %v2766_v2, %s2569_s25  ;;  %524 = vrot.lane.b32.xlu1 %v2781_v3, %s2571_s26 }
  0x53   : > { %760 = vrot.lane.b32.xlu0 %v2751_v1, %s2573_s29 }
  0x5a   : > { %714 = vrot.lane.b32.xlu2 %v2766_v2, %s2574_s16  ;;  %572 = vrot.lane.b32.xlu1 %v2781_v3, %s2572_s28 }
  0x5b   : > { %808 = vrot.lane.b32.xlu0 %v2751_v1, %s2575_s17 }
  0x62   : > { %526 = vrot.lane.b32.xlu2 %v2796_v4, %s2571_s26  ;;  %762 = vrot.lane.b32.xlu1 %v2766_v2, %s2573_s29 }
  0x63   : > { %620 = vrot.lane.b32.xlu0 %v2781_v3, %s2570_s20 }
  0x6a   : > { %574 = vrot.lane.b32.xlu2 %v2796_v4, %s2572_s28  ;;  %810 = vrot.lane.b32.xlu1 %v2766_v2, %s2575_s17 }
  0x6b   : > { %668 = vrot.lane.b32.xlu0 %v2781_v3, %s2569_s25 }
  0x72   : > { %764 = vrot.lane.b32.xlu2 %v2781_v3, %s2573_s29  ;;  %622 = vrot.lane.b32.xlu1 %v2796_v4, %s2570_s20 }
  0x73   : > { %716 = vrot.lane.b32.xlu0 %v2781_v3, %s2574_s16 }
  0x7a   : > { %812 = vrot.lane.b32.xlu2 %v2781_v3, %s2575_s17  ;;  %670 = vrot.lane.b32.xlu1 %v2796_v4, %s2569_s25 }
  0x7b   : > { %528 = vrot.lane.b32.xlu0 %v2817_v5, %s2571_s26 }
  0x82   : > { %624 = vrot.lane.b32.xlu2 %v2817_v5, %s2570_s20  ;;  %718 = vrot.lane.b32.xlu1 %v2796_v4, %s2574_s16 }
  0x83   : > { %576 = vrot.lane.b32.xlu0 %v2817_v5, %s2572_s28 }
  0x84   : > { %v663_v6 = vpop.permute.xlu2 %662 }
  0x8a   : > { %672 = vrot.lane.b32.xlu2 %v2817_v5, %s2569_s25  ;;  %530 = vrot.lane.b32.xlu1 %v2832_v7, %s2571_s26 }
  0x8b   : > { %766 = vrot.lane.b32.xlu0 %v2796_v4, %s2573_s29 }
  0x8c   : > { %v569_v8 = vpop.permute.xlu2 %568 }
  0x92   : > { %720 = vrot.lane.b32.xlu2 %v2817_v5, %s2574_s16  ;;  %578 = vrot.lane.b32.xlu1 %v2832_v7, %s2572_s28 }
  0x93   : > { %814 = vrot.lane.b32.xlu0 %v2796_v4, %s2575_s17 }
  0x94   : > { %v759_v9 = vpop.permute.xlu2 %758 }
  0x9a   : > { %532 = vrot.lane.b32.xlu2 %v2847_v10, %s2571_s26  ;;  %768 = vrot.lane.b32.xlu1 %v2817_v5, %s2573_s29 }
  0x9b   : > { %626 = vrot.lane.b32.xlu0 %v2832_v7, %s2570_s20 }
  0x9c   : > { %v807_v11 = vpop.permute.xlu2 %806  ;;  %v615_v12 = vpop.permute.xlu1 %614 }
  0x9d   : > { %v519_v13 = vpop.permute.xlu0 %518 }
  0x9e   : > { %v855_v14 = vsel %vm854_vm0, %v2742_v0, %v519_v13 }
  0xa2   : > { %580 = vrot.lane.b32.xlu2 %v2847_v10, %s2572_s28  ;;  %816 = vrot.lane.b32.xlu1 %v2817_v5, %s2575_s17 }
  0xa3   : > { %674 = vrot.lane.b32.xlu0 %v2832_v7, %s2569_s25 }
  0xa4   : > { %v619_v15 = vpop.permute.xlu2 %618  ;;  %v521_v16 = vpop.permute.xlu1 %520 }
  0xa5   : > { %v567_v17 = vpop.permute.xlu0 %566  ;;  %v856_v26 = vsel %vm854_vm0, %v2751_v1, %v521_v16 }
  0xa6   : > { %v872_v18 = vsel %vm871_vm1, %v855_v14, %v567_v17  ;;  %v873_v29 = vsel %vm871_vm1, %v856_v26, %v569_v8 }
  0xa7   : > { %v889_v19 = vsel %vm888_vm2, %v872_v18, %v615_v12  ;;  %v2962_v18 = vld [vmem:[%s2739_s18 + $0x58] sm:$0xff] }
  0xa8   : > { %v906_v22 = vsel %vm905_vm3, %v889_v19, %v663_v6  ;;  %v2576_v19 = vmov 0.0  }
  0xaa   : > { %770 = vrot.lane.b32.xlu2 %v2832_v7, %s2573_s29  ;;  %628 = vrot.lane.b32.xlu1 %v2847_v10, %s2570_s20 }
  0xab   : > { %722 = vrot.lane.b32.xlu0 %v2832_v7, %s2574_s16 }
  0xac   : > { %v667_v20 = vpop.permute.xlu2 %666  ;;  %v617_v21 = vpop.permute.xlu1 %616 }
  0xad   : > { %v711_v23 = vpop.permute.xlu0 %710  ;;  %v890_v30 = vsel %vm888_vm2, %v873_v29, %v617_v21 }
  0xae   : > { %v923_v24 = vsel %vm922_vm4, %v906_v22, %v711_v23 }
  0xaf   : > { %v940_v25 = vsel %vm939_vm5, %v923_v24, %v759_v9 }
  0xb0   : > { %v2880_v28 = vsel %vm956_vm6, %v940_v25, %v807_v11 }
  0xb2   : > { %818 = vrot.lane.b32.xlu2 %v2832_v7, %s2575_s17  ;;  %676 = vrot.lane.b32.xlu1 %v2847_v10, %s2569_s25 }
  0xb3   : > { %534 = vrot.lane.b32.xlu0 %v2877_v27, %s2571_s26 }
  0xb4   : > { %v715_v31 = vpop.permute.xlu2 %714  ;;  %v665_v32 = vpop.permute.xlu1 %664 }
  0xb5   : > { %v907_v33 = vsel %vm905_vm3, %v890_v30, %v665_v32  ;;  %v523_v34 = vpop.permute.xlu0 %522 }
  0xb6   : > { %v857_v35 = vsel %vm854_vm0, %v2766_v2, %v523_v34 }
  0xba   : > { %630 = vrot.lane.b32.xlu2 %v2877_v27, %s2570_s20  ;;  %724 = vrot.lane.b32.xlu1 %v2847_v10, %s2574_s16 }
  0xbb   : > { %582 = vrot.lane.b32.xlu0 %v2877_v27, %s2572_s28 }
  0xbc   : > { %v527_v36 = vpop.permute.xlu2 %526  ;;  %v713_v37 = vpop.permute.xlu1 %712 }
  0xbd   : > { %v924_v38 = vsel %vm922_vm4, %v907_v33, %v713_v37  ;;  %v571_v39 = vpop.permute.xlu0 %570  ;;  %v859_v45 = vsel %vm854_vm0, %v2796_v4, %v527_v36  ;;  %v2577_v36 = vmov 1.0  }
  0xbe   : > { %v874_v40 = vsel %vm871_vm1, %v857_v35, %v571_v39 }
  0xbf   : > { %v891_v41 = vsel %vm888_vm2, %v874_v40, %v619_v15 }
  0xc0   : > { %v908_v43 = vsel %vm905_vm3, %v891_v41, %v667_v20 }
  0xc1   : > { %v925_v44 = vsel %vm922_vm4, %v908_v43, %v715_v31 }
  0xc2   : > { %678 = vrot.lane.b32.xlu2 %v2877_v27, %s2569_s25  ;;  %536 = vrot.lane.b32.xlu1 %v2903_v42, %s2571_s26 }
  0xc3   : > { %772 = vrot.lane.b32.xlu0 %v2847_v10, %s2573_s29 }
  0xc4   : > { %v575_v46 = vpop.permute.xlu2 %574  ;;  %v525_v47 = vpop.permute.xlu1 %524 }
  0xc5   : > { %v876_v48 = vsel %vm871_vm1, %v859_v45, %v575_v46  ;;  %v761_v49 = vpop.permute.xlu0 %760  ;;  %v858_v51 = vsel %vm854_vm0, %v2781_v3, %v525_v47  ;;  %v2578_v45 = vmov 2.0   ;;  %v3002_v46 = vld [vmem:[%s2739_s18 + $0x60] sm:$0xff] }
  0xc6   : > { %v941_v50 = vsel %vm939_vm5, %v924_v38, %v761_v49 }
  0xca   : > { %726 = vrot.lane.b32.xlu2 %v2877_v27, %s2574_s16  ;;  %584 = vrot.lane.b32.xlu1 %v2903_v42, %s2572_s28 }
  0xcb   : > { %820 = vrot.lane.b32.xlu0 %v2847_v10, %s2575_s17 }
  0xcc   : > { %v765_v52 = vpop.permute.xlu2 %764  ;;  %v573_v53 = vpop.permute.xlu1 %572 }
  0xcd   : > { %v875_v54 = vsel %vm871_vm1, %v858_v51, %v573_v53  ;;  %v809_v55 = vpop.permute.xlu0 %808 }
  0xce   : > { %v2927_v56 = vsel %vm956_vm6, %v941_v50, %v809_v55 }
  0xd2   : > { %774 = vrot.lane.b32.xlu1 %v2877_v27, %s2573_s29 }
  0xd3   : > { %632 = vrot.lane.b32.xlu0 %v2903_v42, %s2570_s20 }
  0xd4   : > { %v813_v57 = vpop.permute.xlu2 %812  ;;  %v763_v58 = vpop.permute.xlu1 %762 }
  0xd5   : > { %v942_v59 = vsel %vm939_vm5, %v925_v44, %v763_v58  ;;  %v621_v60 = vpop.permute.xlu0 %620 }
  0xd6   : > { %v892_v61 = vsel %vm888_vm2, %v875_v54, %v621_v60 }
  0xda   : > { %680 = vrot.lane.b32.xlu1 %v2903_v42, %s2569_s25 }
  0xdb   : > { %538 = vrot.lane.b32.xlu0 %v2936_v62, %s2571_s26 }
  0xdc   : > { %v625_v63 = vpop.permute.xlu2 %624  ;;  %v811_v0 = vpop.permute.xlu1 %810 }
  0xdd   : > { %v2943_v1 = vsel %vm956_vm6, %v942_v59, %v811_v0  ;;  %v669_v2 = vpop.permute.xlu0 %668  ;;  %v2579_v59 = vmov 3.0  }
  0xde   : > { %v909_v3 = vsel %vm905_vm3, %v892_v61, %v669_v2 }
  0xe2   : > { %586 = vrot.lane.b32.xlu1 %v2936_v62, %s2572_s28 }
  0xe3   : > { %822 = vrot.lane.b32.xlu0 %v2877_v27, %s2575_s17 }
  0xe4   : > { %v673_v4 = vpop.permute.xlu2 %672  ;;  %v623_v6 = vpop.permute.xlu1 %622 }
  0xe5   : > { %v893_v8 = vsel %vm888_vm2, %v876_v48, %v623_v6  ;;  %v717_v9 = vpop.permute.xlu0 %716 }
  0xe6   : > { %v926_v11 = vsel %vm922_vm4, %v909_v3, %v717_v9  ;;  %v3028_v3 = vld [vmem:[%s2739_s18 + $0x68] sm:$0xff] }
  0xe7   : > { %v943_v12 = vsel %vm939_vm5, %v926_v11, %v765_v52 }
  0xe8   : > { %v2954_v13 = vsel %vm956_vm6, %v943_v12, %v813_v57 }
  0xea   : > { %634 = vrot.lane.b32.xlu1 %v2936_v62, %s2570_s20 }
  0xeb   : > { %728 = vrot.lane.b32.xlu0 %v2903_v42, %s2574_s16 }
  0xec   : > { %v721_v14 = vpop.permute.xlu2 %720  ;;  %v671_v15 = vpop.permute.xlu1 %670 }
  0xed   : > { %v910_v16 = vsel %vm905_vm3, %v893_v8, %v671_v15  ;;  %v529_v17 = vpop.permute.xlu0 %528 }
  0xee   : > { %v860_v20 = vsel %vm854_vm0, %v2817_v5, %v529_v17 }
  0xf0   : > { %981 = vxpose.xlu2.b32.start [1/16] %v2576_v19, 128 }
  0xf2   : > { %540 = vrot.lane.b32.xlu1 %v2962_v18, %s2571_s26 }
  0xf3   : > { %776 = vrot.lane.b32.xlu0 %v2903_v42, %s2573_s29 }
  0xf4   : > { %v533_v21 = vpop.permute.xlu2 %532  ;;  %v719_v22 = vpop.permute.xlu1 %718 }
  0xf5   : > { %v927_v23 = vsel %vm922_vm4, %v910_v16, %v719_v22  ;;  %v577_v24 = vpop.permute.xlu0 %576  ;;  %v862_v5 = vsel %vm854_vm0, %v2847_v10, %v533_v21 }
  0xf6   : > { %v877_v25 = vsel %vm871_vm1, %v860_v20, %v577_v24 }
  0xf7   : > { %v894_v26 = vsel %vm888_vm2, %v877_v25, %v625_v63 }
  0xf8   : > { %982 = vxpose.xlu2.b32.cont [2/16] %v2576_v19, 128  ;;  %v911_v29 = vsel %vm905_vm3, %v894_v26, %v673_v4  ;;  %v2581_v26 = vmov 5.0  }
  0xf9   : > { %v928_v30 = vsel %vm922_vm4, %v911_v29, %v721_v14  ;;  %v2580_v14 = vmov 4.0  }
  0xfa   : > { %824 = vrot.lane.b32.xlu1 %v2903_v42, %s2575_s17 }
  0xfb   : > { %682 = vrot.lane.b32.xlu0 %v2936_v62, %s2569_s25 }
  0xfc   : > { %v581_v31 = vpop.permute.xlu2 %580  ;;  %v531_v32 = vpop.permute.xlu1 %530 }
  0xfd   : > { %v879_v33 = vsel %vm871_vm1, %v862_v5, %v581_v31  ;;  %v767_v34 = vpop.permute.xlu0 %766  ;;  %v861_v37 = vsel %vm854_vm0, %v2832_v7, %v531_v32 }
  0xfe   : > { %v944_v35 = vsel %vm939_vm5, %v927_v23, %v767_v34 }
 0x100   : > { %983 = vxpose.xlu2.b32.cont [3/16] %v2577_v36, 128 }
 0x102   : > { %730 = vrot.lane.b32.xlu1 %v2936_v62, %s2574_s16 }
 0x103   : > { %588 = vrot.lane.b32.xlu0 %v2962_v18, %s2572_s28 }
 0x104   : > { %v579_v10 = vpop.permute.xlu1 %578  ;;  %v771_v47 = vpop.permute.xlu2 %770 }
 0x105   : > { %v878_v38 = vsel %vm871_vm1, %v861_v37, %v579_v10  ;;  %v815_v39 = vpop.permute.xlu0 %814  ;;  %v2582_v37 = vmov 6.0  }
 0x106   : > { %v2993_v40 = vsel %vm956_vm6, %v944_v35, %v815_v39 }
 0x108   : > { %984 = vxpose.xlu2.b32.cont [4/16] %v2577_v36, 128 }
 0x10a   : > { %778 = vrot.lane.b32.xlu1 %v2936_v62, %s2573_s29 }
 0x10b   : > { %636 = vrot.lane.b32.xlu0 %v2962_v18, %s2570_s20 }
 0x10c   : > { %v769_v7 = vpop.permute.xlu1 %768  ;;  %v819_v52 = vpop.permute.xlu2 %818 }
 0x10d   : > { %v945_v41 = vsel %vm939_vm5, %v928_v30, %v769_v7  ;;  %v627_v43 = vpop.permute.xlu0 %626 }
 0x10e   : > { %v895_v44 = vsel %vm888_vm2, %v878_v38, %v627_v43 }
 0x110   : > { %985 = vxpose.xlu2.b32.cont [5/16] %v2578_v45, 128 }
 0x112   : > { %684 = vrot.lane.b32.xlu1 %v2962_v18, %s2569_s25 }
 0x113   : > { %542 = vrot.lane.b32.xlu0 %v3002_v46, %s2571_s26 }
 0x114   : > { %v817_v48 = vpop.permute.xlu1 %816  ;;  %v631_v63 = vpop.permute.xlu2 %630 }
 0x115   : > { %v3009_v49 = vsel %vm956_vm6, %v945_v41, %v817_v48  ;;  %v675_v50 = vpop.permute.xlu0 %674  ;;  %v2583_v48 = vmov 7.0  }
 0x116   : > { %v912_v51 = vsel %vm905_vm3, %v895_v44, %v675_v50 }
 0x118   : > { %986 = vxpose.xlu2.b32.cont [6/16] %v2578_v45, 128 }
 0x11a   : > { %590 = vrot.lane.b32.xlu1 %v3002_v46, %s2572_s28 }
 0x11b   : > { %826 = vrot.lane.b32.xlu0 %v2936_v62, %s2575_s17 }
 0x11c   : > { %v629_v53 = vpop.permute.xlu1 %628  ;;  %v679_v11 = vpop.permute.xlu2 %678 }
 0x11d   : > { %v896_v54 = vsel %vm888_vm2, %v879_v33, %v629_v53  ;;  %v723_v55 = vpop.permute.xlu0 %722  ;;  %v3063_v33 = vld [vmem:[%s2739_s18 + $0x70] sm:$0xff] }
 0x11e   : > { %v929_v57 = vsel %vm922_vm4, %v912_v51, %v723_v55 }
 0x11f   : > { %v946_v58 = vsel %vm939_vm5, %v929_v57, %v771_v47  ;;  %v3087_v47 = vld [vmem:[%s2739_s18 + $0x78] sm:$0xff]  ;;  %s2089_s18 = sshll.u32 %s2085_s19, 4  ;;  %s2090_s18 = int_to_ptr.hbm [resolvable:$true] %s2089_s18 }
 0x120   : > { %987 = vxpose.xlu2.b32.cont [7/16] %v2579_v59, 128  ;;  %v3020_v60 = vsel %vm956_vm6, %v946_v58, %v819_v52 }
 0x122   : > { %638 = vrot.lane.b32.xlu1 %v3002_v46, %s2570_s20 }
 0x123   : > { %732 = vrot.lane.b32.xlu0 %v2962_v18, %s2574_s16 }
 0x124   : > { %v677_v61 = vpop.permute.xlu1 %676 }
 0x125   : > { %v913_v0 = vsel %vm905_vm3, %v896_v54, %v677_v61  ;;  %v535_v2 = vpop.permute.xlu0 %534 }
 0x126   : > { %v863_v4 = vsel %vm854_vm0, %v2877_v27, %v535_v2 }
 0x128   : > { %988 = vxpose.xlu2.b32.cont [8/16] %v2579_v59, 128 }
 0x12a   : > { %544 = vrot.lane.b32.xlu1 %v3028_v3, %s2571_s26 }
 0x12b   : > { %780 = vrot.lane.b32.xlu0 %v2962_v18, %s2573_s29 }
 0x12c   : > { %v725_v6 = vpop.permute.xlu1 %724 }
 0x12d   : > { %v583_v8 = vpop.permute.xlu0 %582  ;;  %v930_v16 = vsel %vm922_vm4, %v913_v0, %v725_v6 }
 0x12e   : > { %v880_v9 = vsel %vm871_vm1, %v863_v4, %v583_v8 }
 0x12f   : > { %v897_v12 = vsel %vm888_vm2, %v880_v9, %v631_v63 }
 0x130   : > { %989 = vxpose.xlu2.b32.cont [9/16] %v2580_v14, 128  ;;  %v914_v15 = vsel %vm905_vm3, %v897_v12, %v679_v11 }
 0x132   : > { %828 = vrot.lane.b32.xlu1 %v2962_v18, %s2575_s17 }
 0x133   : > { %686 = vrot.lane.b32.xlu0 %v3002_v46, %s2569_s25 }
 0x134   : > { %v537_v27 = vpop.permute.xlu1 %536 }
 0x135   : > { %v773_v17 = vpop.permute.xlu0 %772  ;;  %v864_v21 = vsel %vm854_vm0, %v2903_v42, %v537_v27  ;;  %v727_v42 = vpop.permute.xlu2 %726 }
 0x136   : > { %v947_v20 = vsel %vm939_vm5, %v930_v16, %v773_v17  ;;  %v931_v30 = vsel %vm922_vm4, %v914_v15, %v727_v42 }
 0x138   : > { %990 = vxpose.xlu2.b32.cont [10/16] %v2580_v14, 128 }
 0x13a   : > { %734 = vrot.lane.b32.xlu1 %v3002_v46, %s2574_s16 }
 0x13b   : > { %592 = vrot.lane.b32.xlu0 %v3028_v3, %s2572_s28 }
 0x13c   : > { %v585_v22 = vpop.permute.xlu1 %584 }
 0x13d   : > { %v881_v23 = vsel %vm871_vm1, %v864_v21, %v585_v22  ;;  %v821_v24 = vpop.permute.xlu0 %820 }
 0x13e   : > { %v3053_v25 = vsel %vm956_vm6, %v947_v20, %v821_v24 }
 0x140   : > { %991 = vxpose.xlu2.b32.cont [11/16] %v2581_v26, 128 }
 0x142   : > { %782 = vrot.lane.b32.xlu1 %v3002_v46, %s2573_s29 }
 0x143   : > { %640 = vrot.lane.b32.xlu0 %v3028_v3, %s2570_s20 }
 0x144   : > { %v775_v29 = vpop.permute.xlu1 %774 }
 0x145   : > { %v948_v5 = vsel %vm939_vm5, %v931_v30, %v775_v29  ;;  %v633_v31 = vpop.permute.xlu0 %632 }
 0x146   : > { %v898_v32 = vsel %vm888_vm2, %v881_v23, %v633_v31 }
 0x148   : > { %992 = vxpose.xlu2.b32.cont [12/16] %v2581_v26, 128  ;;  %v1029_v26 = vlaneseq }
 0x14a   : > { %688 = vrot.lane.b32.xlu1 %v3028_v3, %s2569_s25  ;;  %v3142_v30 = vshrl.u32 %v1029_v26, 7 }
 0x14b   : > { %546 = vrot.lane.b32.xlu0 %v3063_v33, %s2571_s26 }
 0x14c   : > { %v681_v34 = vpop.permute.xlu1 %680 }
 0x14d   : > { %v915_v35 = vsel %vm905_vm3, %v898_v32, %v681_v34  ;;  %v539_v36 = vpop.permute.xlu0 %538 }
 0x14e   : > { %v865_v10 = vsel %vm854_vm0, %v2936_v62, %v539_v36 }
 0x150   : > { %993 = vxpose.xlu2.b32.cont [13/16] %v2582_v37, 128 }
 0x152   : > { %594 = vrot.lane.b32.xlu1 %v3063_v33, %s2572_s28 }
 0x153   : > { %830 = vrot.lane.b32.xlu0 %v3002_v46, %s2575_s17 }
 0x154   : > { %v587_v38 = vpop.permute.xlu1 %586 }
 0x155   : > { %v882_v39 = vsel %vm871_vm1, %v865_v10, %v587_v38  ;;  %v823_v7 = vpop.permute.xlu0 %822 }
 0x156   : > { %v3078_v41 = vsel %vm956_vm6, %v948_v5, %v823_v7  ;;  %v3144_v5 = vand.u32 127, %v1029_v26  ;;  %v1031_v7 = vadd.s32 8, %v3142_v30 }
 0x158   : > { %994 = vxpose.xlu2.b32.cont [14/16] %v2582_v37, 128  ;;  %vm1048_vm8 = vcmp.eq.s32.totalorder %v3142_v30, %v3144_v5  ;;  %v1032_v37 = vadd.s32 16, %v3142_v30  ;;  %vm1049_vm12 = vcmp.eq.s32.totalorder %v1031_v7, %v3144_v5 }
 0x159   : > { %v2225_v34 = vsel %vm1048_vm8, 1.0, %v2576_v19 }
 0x15a   : > { %642 = vrot.lane.b32.xlu1 %v3063_v33, %s2570_s20  ;;  %vm1050_vm10 = vcmp.eq.s32.totalorder %v1032_v37, %v3144_v5 }
 0x15b   : > { %736 = vrot.lane.b32.xlu0 %v3028_v3, %s2574_s16 }
 0x15c   : > { %v635_v62 = vpop.permute.xlu1 %634 }
 0x15d   : > { %v899_v43 = vsel %vm888_vm2, %v882_v39, %v635_v62  ;;  %v729_v44 = vpop.permute.xlu0 %728 }
 0x15e   : > { %v932_v45 = vsel %vm922_vm4, %v915_v35, %v729_v44 }
 0x160   : > { %995 = vxpose.xlu2.b32.cont [15/16] %v2583_v48, 128 }
 0x162   : > { %548 = vrot.lane.b32.xlu1 %v3087_v47, %s2571_s26 }
 0x163   : > { %784 = vrot.lane.b32.xlu0 %v3028_v3, %s2573_s29 }
 0x164   : > { %v541_v50 = vpop.permute.xlu1 %540 }
 0x165   : > { %v777_v51 = vpop.permute.xlu0 %776  ;;  %v866_v59 = vsel %vm854_vm0, %v2962_v18, %v541_v50  ;;  %v2226_v50 = vsel %vm1049_vm12, 1.0, %v2576_v19 }
 0x166   : > { %v949_v52 = vsel %vm939_vm5, %v932_v45, %v777_v51 }
 0x168   : > { %996 = vxpose.xlu2.b32.end [16/16] %v2583_v48, 128 }
 0x16a   : > { %832 = vrot.lane.b32.xlu1 %v3028_v3, %s2575_s17 }
 0x16b   : > { %690 = vrot.lane.b32.xlu0 %v3063_v33, %s2569_s25 }
 0x16c   : > { %v825_v53 = vpop.permute.xlu1 %824 }
 0x16d   : > { %v3099_v54 = vsel %vm956_vm6, %v949_v52, %v825_v53  ;;  %v683_v55 = vpop.permute.xlu0 %682  ;;  %v1035_v53 = vadd.s32 40, %v3142_v30 }
 0x16e   : > { %v916_v57 = vsel %vm905_vm3, %v899_v43, %v683_v55  ;;  %v1033_v43 = vadd.s32 24, %v3142_v30 }
 0x170   : > { %vm1051_vm14 = vcmp.eq.s32.totalorder %v1033_v43, %v3144_v5 }
 0x171   : > { %v2228_v52 = vsel %vm1051_vm14, 1.0, %v2576_v19 }
 0x172   : > { %644 = vrot.lane.b32.xlu1 %v3087_v47, %s2570_s20  ;;  %s2508_s20 = sshra.s32 %s2090_s18, 4  ;;  %s2509_s20 = int_to_ptr.hbm [resolvable:$true] %s2508_s20 }
 0x173   : > { %738 = vrot.lane.b32.xlu0 %v3063_v33, %s2574_s16  ;;  %s2510_s26 = scalar_lea.hbm %s2509_s20, 8  ;;  %p2515_p3 = scmp.lt.s32.totalorder %s2509_s20, %s3822_s12 }
 0x174   : > { %v731_v58 = vpop.permute.xlu1 %730  ;;  %p2511_p0 = scmp.ne.s32.totalorder %s2509_s20, %s2510_s26 }
 0x175   : > { %v933_v61 = vsel %vm922_vm4, %v916_v57, %v731_v58  ;;  %v589_v63 = vpop.permute.xlu0 %588  ;;  %v1034_v57 = vadd.s32 32, %v3142_v30 }
 0x176   : > { %v883_v0 = vsel %vm871_vm1, %v866_v59, %v589_v63  ;;  %p2512_p1 = pnand %p2511_p0, %p2688_p5 }
 0x178   : > { %p2513_p2 = pneg %p2512_p1 }
 0x17a   : > { %692 = vrot.lane.b32.xlu1 %v3087_v47, %s2569_s25 }
 0x17b   : > { %786 = vrot.lane.b32.xlu0 %v3063_v33, %s2573_s29 }
 0x17c   : > { %v779_v2 = vpop.permute.xlu1 %778 }
 0x17d   : > { %v950_v4 = vsel %vm939_vm5, %v933_v61, %v779_v2  ;;  %v637_v6 = vpop.permute.xlu0 %636 }
 0x17e   : > { %v900_v8 = vsel %vm888_vm2, %v883_v0, %v637_v6 }
 0x182   : > { %740 = vrot.lane.b32.xlu1 %v3087_v47, %s2574_s16 }
 0x183   : > { %834 = vrot.lane.b32.xlu0 %v3063_v33, %s2575_s17 }
 0x184   : > { %v685_v18 = vpop.permute.xlu1 %684 }
 0x185   : > { %v917_v9 = vsel %vm905_vm3, %v900_v8, %v685_v18  ;;  %v543_v11 = vpop.permute.xlu0 %542  ;;  %v1036_v8 = vadd.s32 48, %v3142_v30 }
 0x186   : > { %v867_v14 = vsel %vm854_vm0, %v3002_v46, %v543_v11 }
 0x189   : > { %v997_v12 = vpop.trf.xlu2 }
 0x18a   : > { %788 = vrot.lane.b32.xlu1 %v3087_v47, %s2573_s29  ;;  %vm2209_vm7 = vcmp.eq.f32.partialorder %v997_v12, 0.0 }
 0x18b   : > { %v1096_v32 = vsel %vm2209_vm7, %v2880_v28, 0.0  ;;  %v2227_v28 = vsel %vm1050_vm10, 1.0, %v2576_v19  ;;  %vm1053_vm7 = vcmp.eq.s32.totalorder %v1035_v53, %v3144_v5  ;;  %v1042_v53 = vadd.s32 96, %v3142_v30 }
 0x18c   : > { %v591_v15 = vpop.permute.xlu1 %590  ;;  %v3155_v10 = vadd.f32 %v2225_v34, %v1096_v32  ;;  %v2230_v63 = vsel %vm1053_vm7, 1.0, %v2576_v19 }
 0x18d   : > { %v3126_v27 = vsel %vm871_vm1, %v867_v14, %v591_v15  ;;  %v827_v16 = vpop.permute.xlu0 %826 }
 0x18e   : > { %v3129_v17 = vsel %vm956_vm6, %v950_v4, %v827_v16  ;;  %v1037_v4 = vadd.s32 56, %v3142_v30  ;;  %v1038_v16 = vadd.s32 64, %v3142_v30 }
 0x190   : > { %vm1056_vm14 = vcmp.eq.s32.totalorder %v1038_v16, %v3144_v5 }
 0x191   : > { %v998_v20 = vpop.trf.xlu2 }
 0x192   : > { %836 = vrot.lane.b32.xlu1 %v3087_v47, %s2575_s17  ;;  %vm2210_vm11 = vcmp.eq.f32.partialorder %v998_v20, 0.0  ;;  %s2514_s17 = scalar_lea.hbm %s3822_s12, 16 }
 0x193   : > { %p2516_p4 = scmp.lt.s32.totalorder %s2514_s17, %s2510_s26 }
 0x194   : > { %v3133_v21 = vpop.permute.xlu1 %638 }
 0x195   : > { %v733_v22 = vpop.permute.xlu0 %732  ;;  %p2517_p7 = por %p2516_p4, %p2515_p3 }
 0x196   : > { %v3136_v46 = vsel %vm922_vm4, %v917_v9, %v733_v22 }
 0x197   : > { %p2518_p8 = pnand %p2517_p7, %p2513_p2 }
 0x199   : > { %v999_v23 = vpop.trf.xlu2 }
 0x19a   : > { %vm2211_vm9 = vcmp.eq.f32.partialorder %v999_v23, 1.0  ;;  %v1039_v23 = vadd.s32 72, %v3142_v30 }
 0x19b   : > { %v1098_v39 = vsel %vm2211_vm9, %v2943_v1, 0.0  ;;  %v1097_v1 = vsel %vm2210_vm11, %v2927_v56, 0.0  ;;  %vm1052_vm9 = vcmp.eq.s32.totalorder %v1034_v57, %v3144_v5  ;;  %vm1055_vm11 = vcmp.eq.s32.totalorder %v1037_v4, %v3144_v5 }
 0x19c   : > { %v3140_v42 = vpop.permute.xlu1 %544  ;;  %v3167_v45 = vadd.f32 %v2227_v28, %v1098_v39  ;;  %v3180_v58 = vadd.f32 %v2226_v50, %v1097_v1  ;;  %v2229_v2 = vsel %vm1052_vm9, 1.0, %v2576_v19  ;;  %v2232_v12 = vsel %vm1055_vm11, 1.0, %v2576_v19 }
 0x19d   : > { %v3138_v24 = vpop.permute.xlu0 %780  ;;  %vm1057_vm7 = vcmp.eq.s32.totalorder %v1039_v23, %v3144_v5  ;;  %vm1060_vm11 = vcmp.eq.s32.totalorder %v1042_v53, %v3144_v5 }
 0x19e   : > { %v2234_v34 = vsel %vm1057_vm7, 1.0, %v2576_v19  ;;  %v951_v50 = vsel %vm939_vm5, %v3136_v46, %v3138_v24 }
 0x1a1   : > { %v1000_v29 = vpop.trf.xlu2 }
 0x1a2   : > { %vm2212_vm13 = vcmp.eq.f32.partialorder %v1000_v29, 1.0 }
 0x1a3   : > { %v1099_v51 = vsel %vm2212_vm13, %v2954_v13, 0.0  ;;  %vm1054_vm13 = vcmp.eq.s32.totalorder %v1036_v8, %v3144_v5  ;;  %v868_v8 = vsel %vm854_vm0, %v3028_v3, %v3140_v42 }
 0x1a4   : > { %v3152_v35 = vpop.permute.xlu1 %828  ;;  %v3182_v59 = vadd.f32 %v2228_v52, %v1099_v51  ;;  %v2231_v15 = vsel %vm1054_vm13, 1.0, %v2576_v19 }
 0x1a5   : > { %v3146_v31 = vpop.permute.xlu0 %686  ;;  %v968_v52 = vsel %vm956_vm6, %v951_v50, %v3152_v35 }
 0x1a9   : > { %v1001_v36 = vpop.trf.xlu2 }
 0x1aa   : > { %vm2213_vm8 = vcmp.eq.f32.partialorder %v1001_v36, 2.0 }
 0x1ab   : > { %v1100_v0 = vsel %vm2213_vm8, %v2993_v40, 0.0 }
 0x1ac   : > { %v3165_v44 = vpop.permute.xlu1 %734  ;;  %v3200_v9 = vadd.f32 %v2229_v2, %v1100_v0  ;;  %v901_v0 = vsel %vm888_vm2, %v3126_v27, %v3133_v21  ;;  %v2237_v2 = vsel %vm1060_vm11, 1.0, %v2576_v19  ;;  %v1043_v27 = vadd.s32 104, %v3142_v30 }
 0x1ad   : > { %1128 = vadd.xlane.f32.xlu0 %v3155_v10  ;;  %v3158_v38 = vpop.permute.xlu0 %592  ;;  %v918_v46 = vsel %vm905_vm3, %v901_v0, %v3146_v31 }
 0x1ae   : > { %v935_v24 = vsel %vm922_vm4, %v918_v46, %v3165_v44  ;;  %v885_v44 = vsel %vm871_vm1, %v868_v8, %v3158_v38  ;;  %vm1061_vm13 = vcmp.eq.s32.totalorder %v1043_v27, %v3144_v5 }
 0x1b1   : > { %v1002_v62 = vpop.trf.xlu2 }
 0x1b2   : > { %vm2214_vm15 = vcmp.eq.f32.partialorder %v1002_v62, 2.0  ;;  %v1041_v62 = vadd.s32 88, %v3142_v30 }
 0x1b3   : > { %v1101_v61 = vsel %vm2214_vm15, %v3009_v49, 0.0 }
 0x1b4   : > { %v3186_v56 = vpop.permute.xlu1 %782  ;;  %v3198_v18 = vadd.f32 %v2230_v63, %v1101_v61  ;;  %vm1059_vm9 = vcmp.eq.s32.totalorder %v1041_v62, %v3144_v5 }
 0x1b5   : > { %1132 = vadd.xlane.f32.xlu0 %v3167_v45  ;;  %v3171_v48 = vpop.permute.xlu0 %640  ;;  %v952_v35 = vsel %vm939_vm5, %v935_v24, %v3186_v56  ;;  %v1040_v56 = vadd.s32 80, %v3142_v30  ;;  %v1045_v24 = vadd.s32 120, %v3142_v30 }
 0x1b9   : > { %v1003_v55 = vpop.trf.xlu2 }
 0x1ba   : > { %vm2215_vm12 = vcmp.eq.f32.partialorder %v1003_v55, 3.0 }
 0x1bb   : > { %v1102_v14 = vsel %vm2215_vm12, %v3020_v60, 0.0  ;;  %v2233_v60 = vsel %vm1056_vm14, 1.0, %v2576_v19  ;;  %vm1058_vm14 = vcmp.eq.s32.totalorder %v1040_v56, %v3144_v5 }
 0x1bc   : > { %1130 = vadd.xlane.f32.xlu1 %v3180_v58  ;;  %v3206_v49 = vpop.permute.xlu1 %688  ;;  %v3216_v26 = vadd.f32 %v2231_v15, %v1102_v14  ;;  %v2238_v15 = vsel %vm1061_vm13, 1.0, %v2576_v19 }
 0x1bd   : > { %1134 = vadd.xlane.f32.xlu0 %v3182_v59  ;;  %v3189_v13 = vpop.permute.xlu0 %546 }
 0x1be   : > { %v869_v3 = vsel %vm854_vm0, %v3063_v33, %v3189_v13  ;;  %v2235_v13 = vsel %vm1058_vm14, 1.0, %v2576_v19 }
 0x1c1   : > { %v1004_v6 = vpop.trf.xlu2 }
 0x1c2   : > { %vm2216_vm10 = vcmp.eq.f32.partialorder %v1004_v6, 3.0 }
 0x1c3   : > { %v1103_v11 = vsel %vm2216_vm10, %v3053_v25, 0.0 }
 0x1c4   : > { %1138 = vadd.xlane.f32.xlu1 %v3198_v18  ;;  %v3213_v22 = vadd.f32 %v2232_v12, %v1103_v11  ;;  %v595_v32 = vpop.permute.xlu1 %594  ;;  %v902_v12 = vsel %vm888_vm2, %v885_v44, %v3171_v48 }
 0x1c5   : > { %1136 = vadd.xlane.f32.xlu0 %v3200_v9  ;;  %v831_v40 = vpop.permute.xlu0 %830 }
 0x1c6   : > { %v969_v6 = vsel %vm956_vm6, %v952_v35, %v831_v40  ;;  %v919_v40 = vsel %vm905_vm3, %v902_v12, %v3206_v49  ;;  %v1044_v49 = vadd.s32 112, %v3142_v30 }
 0x1c9   : > { %v1005_v20 = vpop.trf.xlu2 }
 0x1ca   : > { %vm2217_vm15 = vcmp.eq.f32.partialorder %v1005_v20, 4.0  ;;  %v886_v20 = vsel %vm871_vm1, %v869_v3, %v595_v32 }
 0x1cb   : > { %v1104_v29 = vsel %vm2217_vm15, %v3078_v41, 0.0 }
 0x1cc   : > { %1142 = vadd.xlane.f32.xlu1 %v3213_v22  ;;  %v3227_v37 = vadd.f32 %v2233_v60, %v1104_v29  ;;  %v643_v43 = vpop.permute.xlu1 %642 }
 0x1cd   : > { %1140 = vadd.xlane.f32.xlu0 %v3216_v26  ;;  %v737_v25 = vpop.permute.xlu0 %736 }
 0x1ce   : > { %v936_v42 = vsel %vm922_vm4, %v919_v40, %v737_v25  ;;  %v903_v25 = vsel %vm888_vm2, %v886_v20, %v643_v43 }
 0x1d1   : > { %596 = vrot.lane.b32.xlu2 %v3087_v47, %s2572_s28  ;;  %v1006_v36 = vpop.trf.xlu2  ;;  %s469_s28 = sand.u32 1, %s2556_s22  }
 0x1d2   : > { %vm2218_vm8 = vcmp.eq.f32.partialorder %v1006_v36, 4.0  ;;  %s2202_s29 = sshll.u32 %s469_s28, 3  ;;  %s2075_s25 = scalar_lea.sflag [#allocation4], %s469_s28 }
 0x1d3   : > { %v1105_v39 = vsel %vm2218_vm8, %v3099_v54, 0.0  ;;  %v2236_v54 = vsel %vm1059_vm9, 1.0, %v2576_v19  ;;  %vm1062_vm8 = vcmp.eq.s32.totalorder %v1044_v49, %v3144_v5  ;;  %s471_s7 = scalar_lea.vmem [#allocation8], %s2202_s29 }
 0x1d4   : > { %v3230_v28 = vadd.f32 %v2234_v34, %v1105_v39  ;;  %v3245_v61 = vpop.permute.xlu1 %548  ;;  %s2087_s27 = sshll.u32 %s471_s7, 4  ;;  %s2088_s27 = int_to_ptr.vmem [resolvable:$true] %s2087_s27 }
 0x1d5   : > { %1144 = vadd.xlane.f32.xlu0 %v3227_v37  ;;  %v785_v7 = vpop.permute.xlu0 %784 }
 0x1d6   : > { %1146 = vadd.xlane.f32.xlu1 %v3230_v28  ;;  %v953_v38 = vsel %vm939_vm5, %v936_v42, %v785_v7  ;;  %v2239_v7 = vsel %vm1062_vm8, 1.0, %v2576_v19 }
 0x1d9   : > { %v1007_v41 = vpop.trf.xlu2 }
 0x1da   : > { %vm2219_vm15 = vcmp.eq.f32.partialorder %v1007_v41, 5.0 }
 0x1db   : > { %v1106_v33 = vsel %vm2219_vm15, %v3129_v17, 0.0 }
 0x1dc   : > { %v833_v14 = vpop.permute.xlu1 %832  ;;  %v3294_v39 = vadd.f32 %v2235_v13, %v1106_v33 }
 0x1dd   : > { %v691_v1 = vpop.permute.xlu0 %690  ;;  %v970_v48 = vsel %vm956_vm6, %v953_v38, %v833_v14 }
 0x1de   : > { %v920_v29 = vsel %vm905_vm3, %v903_v25, %v691_v1 }
 0x1e1   : > { %v1008_v51 = vpop.trf.xlu2 }
 0x1e2   : > { %vm2220_vm10 = vcmp.eq.f32.partialorder %v1008_v51, 5.0 }
 0x1e3   : > { %v1107_v55 = vsel %vm2220_vm10, %v968_v52, 0.0  ;;  %vm1063_vm10 = vcmp.eq.s32.totalorder %v1045_v24, %v3144_v5 }
 0x1e4   : > { %v3243_v57 = vadd.f32 %v2236_v54, %v1107_v55  ;;  %v645_v1 = vpop.permute.xlu1 %644 }
 0x1e5   : > { %v739_v63 = vpop.permute.xlu0 %738 }
 0x1e6   : > { %1150 = vadd.xlane.f32.xlu0 %v3243_v57  ;;  %v937_v36 = vsel %vm922_vm4, %v920_v29, %v739_v63 }
 0x1e9   : > { %v1009_v4 = vpop.trf.xlu2 }
 0x1ea   : > { %vm2221_vm12 = vcmp.eq.f32.partialorder %v1009_v4, 6.0 }
 0x1eb   : > { %v1108_v21 = vsel %vm2221_vm12, %v969_v6, 0.0 }
 0x1ec   : > { %v3264_v31 = vadd.f32 %v2237_v2, %v1108_v21  ;;  %v693_v50 = vpop.permute.xlu1 %692  ;;  %v870_v2 = vsel %vm854_vm0, %v3087_v47, %v3245_v61  ;;  %v2240_v47 = vsel %vm1063_vm10, 1.0, %v2576_v19 }
 0x1ed   : > { %v787_v11 = vpop.permute.xlu0 %786 }
 0x1ee   : > { %1152 = vadd.xlane.f32.xlu1 %v3264_v31  ;;  %v954_v32 = vsel %vm939_vm5, %v937_v36, %v787_v11 }
 0x1f1   : > { %v1010_v16 = vpop.trf.xlu2 }
 0x1f2   : > { %vm2222_vm7 = vcmp.eq.f32.partialorder %v1010_v16, 6.0 }
 0x1f3   : > { %v1109_v23 = vsel %vm2222_vm7, %v970_v48, 0.0 }
 0x1f4   : > { %v3285_v60 = vadd.f32 %v2238_v15, %v1109_v23  ;;  %v741_v54 = vpop.permute.xlu1 %740 }
 0x1f5   : > { %v835_v34 = vpop.permute.xlu0 %834 }
 0x1f6   : > { %1154 = vadd.xlane.f32.xlu0 %v3285_v60  ;;  %v971_v41 = vsel %vm956_vm6, %v954_v32, %v835_v34 }
 0x1f9   : > { %v1011_v17 = vpop.trf.xlu2 }
 0x1fa   : > { %vm2223_vm9 = vcmp.eq.f32.partialorder %v1011_v17, 7.0  ;;  %1148 = vadd.xlane.f32.xlu2 %v3294_v39 }
 0x1fb   : > { %v1110_v62 = vsel %vm2223_vm9, %v971_v41, 0.0 }
 0x1fc   : > { %v3300_v43 = vadd.f32 %v2239_v7, %v1110_v62  ;;  %v789_v51 = vpop.permute.xlu1 %788 }
 0x1fe   : > { %1156 = vadd.xlane.f32.xlu1 %v3300_v43 }
 0x201   : > { %v1012_v53 = vpop.trf.xlu2 }
 0x202   : > { %vm2224_vm0 = vcmp.eq.f32.partialorder %v1012_v53, 7.0 }
 0x204   : > { %v837_v63 = vpop.permute.xlu1 %836 }
 0x220   : > { %v1129_v52 = vpop.xlane.xlu0 %1128 }
 0x221   : > { %2370 = vrsqrt.f32 %v1129_v52 }
 0x227   : > { %v2371_v55 = vpop.eup %2370 }
 0x228   : > { %v1161_v0 = vmul.f32 %v2371_v55, %v1129_v52  ;;  %v1133_v46 = vpop.xlane.xlu0 %1132 }
 0x229   : > { %2372 = vrsqrt.f32 %v1133_v46  ;;  %vm1186_vm12 = vweird.f32 %v1133_v46 }
 0x22a   : > { %v1162_v35 = vmul.f32 %v2371_v55, %v1161_v0 }
 0x22b   : > { %v597_v4 = vpop.permute.xlu2 %596 }
 0x22c   : > { %v1163_v6 = vmul.f32 0.5, %v1162_v35  ;;  %v887_v27 = vsel %vm871_vm1, %v870_v2, %v597_v4  ;;  %vm1167_vm1 = vweird.f32 %v2371_v55 }
 0x22d   : > { %v904_v21 = vsel %vm888_vm2, %v887_v27, %v645_v1  ;;  %vm1166_vm2 = vweird.f32 %v1129_v52 }
 0x22e   : > { %v921_v8 = vsel %vm905_vm3, %v904_v21, %v693_v50  ;;  %v1164_v44 = vsub.f32 1.5, %v1163_v6  ;;  %vm1168_vm3 = vmor %vm1166_vm2, %vm1167_vm1 }
 0x22f   : > { %v938_v11 = vsel %vm922_vm4, %v921_v8, %v741_v54  ;;  %v1131_v30 = vpop.xlane.xlu1 %1130  ;;  %v2373_v40 = vpop.eup %2372 }
 0x230   : > { %2374 = vrsqrt.f32 %v1131_v30  ;;  %v1135_v56 = vpop.xlane.xlu0 %1134  ;;  %v955_v12 = vsel %vm939_vm5, %v938_v11, %v789_v51  ;;  %v1165_v5 = vmul.f32 %v2371_v55, %v1164_v44  ;;  %v1181_v42 = vmul.f32 %v2373_v40, %v1133_v46 }
 0x231   : > { %v972_v61 = vsel %vm956_vm6, %v955_v12, %v837_v63  ;;  %2376 = vrsqrt.f32 %v1135_v56  ;;  %vm1176_vm5 = vweird.f32 %v1131_v30  ;;  %vm1187_vm11 = vweird.f32 %v2373_v40 }
 0x232   : > { %v1111_v14 = vsel %vm2224_vm0, %v972_v61, 0.0  ;;  %v3318_v16 = vsel %vm1168_vm3, %v2371_v55, %v1165_v5  ;;  %v1182_v19 = vmul.f32 %v2373_v40, %v1181_v42  ;;  %vm1188_vm13 = vmor %vm1186_vm12, %vm1187_vm11  ;;  %vm1196_vm15 = vweird.f32 %v1135_v56 }
 0x233   : > { %v3315_v3 = vadd.f32 %v2240_v47, %v1111_v14 }
 0x234   : > { %v1183_v33 = vmul.f32 0.5, %v1182_v19 }
 0x235   : > { %1158 = vadd.xlane.f32.xlu0 %v3315_v3 }
 0x236   : > { %v2375_v38 = vpop.eup %2374  ;;  %v1184_v34 = vsub.f32 1.5, %v1183_v33 }
 0x237   : > { %v1171_v15 = vmul.f32 %v2375_v38, %v1131_v30  ;;  %v2377_v20 = vpop.eup %2376  ;;  %vm1177_vm4 = vweird.f32 %v2375_v38  ;;  %v1139_v32 = vpop.xlane.xlu1 %1138 }
 0x238   : > { %1320 = vxpose.xlu1.b32.start [1/16] %v3318_v16, 128  ;;  %v1137_v49 = vpop.xlane.xlu0 %1136  ;;  %v1191_v25 = vmul.f32 %v2377_v20, %v1135_v56  ;;  %vm1178_vm6 = vmor %vm1176_vm5, %vm1177_vm4  ;;  %v1185_v1 = vmul.f32 %v2373_v40, %v1184_v34  ;;  %vm1197_vm14 = vweird.f32 %v2377_v20  ;;  %vm1216_vm1 = vweird.f32 %v1139_v32 }
 0x239   : > { %v1172_v48 = vmul.f32 %v2375_v38, %v1171_v15  ;;  %2378 = vrsqrt.f32 %v1137_v49  ;;  %vm1198_vm7 = vmor %vm1196_vm15, %vm1197_vm14  ;;  %vm1206_vm9 = vweird.f32 %v1137_v49 }
 0x23a   : > { %v1192_v36 = vmul.f32 %v2377_v20, %v1191_v25  ;;  %2380 = vrsqrt.f32 %v1139_v32  ;;  %v3324_v52 = vsel %vm1188_vm13, %v2373_v40, %v1185_v1 }
 0x23b   : > { %v1173_v23 = vmul.f32 0.5, %v1172_v48 }
 0x23c   : > { %v1193_v41 = vmul.f32 0.5, %v1192_v36 }
 0x23d   : > { %v1174_v13 = vsub.f32 1.5, %v1173_v23 }
 0x23e   : > { %v1194_v50 = vsub.f32 1.5, %v1193_v41 }
 0x23f   : > { %v1175_v29 = vmul.f32 %v2375_v38, %v1174_v13  ;;  %v2379_v17 = vpop.eup %2378  ;;  %v1143_v2 = vpop.xlane.xlu1 %1142 }
 0x240   : > { %v1201_v62 = vmul.f32 %v2379_v17, %v1137_v49  ;;  %v1141_v51 = vpop.xlane.xlu0 %1140  ;;  %v2381_v53 = vpop.eup %2380  ;;  %v1195_v0 = vmul.f32 %v2377_v20, %v1194_v50  ;;  %vm1207_vm8 = vweird.f32 %v2379_v17  ;;  %vm1236_vm11 = vweird.f32 %v1143_v2 }
 0x241   : > { %v3321_v7 = vsel %vm1178_vm6, %v2375_v38, %v1175_v29  ;;  %2382 = vrsqrt.f32 %v1141_v51  ;;  %v1211_v55 = vmul.f32 %v2381_v53, %v1139_v32  ;;  %vm1208_vm10 = vmor %vm1206_vm9, %vm1207_vm8  ;;  %vm1217_vm0 = vweird.f32 %v2381_v53 }
 0x242   : > { %1321 = vxpose.xlu1.b32.cont [2/16] %v3321_v7, 128  ;;  %v1202_v54 = vmul.f32 %v2379_v17, %v1201_v62  ;;  %v3327_v46 = vsel %vm1198_vm7, %v2377_v20, %v1195_v0  ;;  %2384 = vrsqrt.f32 %v1143_v2  ;;  %vm1218_vm2 = vmor %vm1216_vm1, %vm1217_vm0  ;;  %vm1226_vm4 = vweird.f32 %v1141_v51 }
 0x243   : > { %v1212_v24 = vmul.f32 %v2381_v53, %v1211_v55 }
 0x244   : > { %v1203_v63 = vmul.f32 0.5, %v1202_v54 }
 0x245   : > { %v1213_v6 = vmul.f32 0.5, %v1212_v24 }
 0x246   : > { %v1204_v35 = vsub.f32 1.5, %v1203_v63 }
 0x247   : > { %v2383_v4 = vpop.eup %2382  ;;  %v1214_v8 = vsub.f32 1.5, %v1213_v6 }
 0x248   : > { %v1221_v27 = vmul.f32 %v2383_v4, %v1141_v51  ;;  %v1205_v21 = vmul.f32 %v2379_v17, %v1204_v35  ;;  %v1145_v11 = vpop.xlane.xlu0 %1144  ;;  %v2385_v56 = vpop.eup %2384  ;;  %vm1227_vm3 = vweird.f32 %v2383_v4 }
 0x249   : > { %2386 = vrsqrt.f32 %v1145_v11  ;;  %v1231_v12 = vmul.f32 %v2385_v56, %v1143_v2  ;;  %v1215_v61 = vmul.f32 %v2381_v53, %v1214_v8  ;;  %v1147_v5 = vpop.xlane.xlu1 %1146  ;;  %vm1228_vm5 = vmor %vm1226_vm4, %vm1227_vm3  ;;  %vm1237_vm6 = vweird.f32 %v2385_v56 }
 0x24a   : > { %1322 = vxpose.xlu1.b32.cont [3/16] %v3324_v52, 128  ;;  %v1222_v44 = vmul.f32 %v2383_v4, %v1221_v27  ;;  %v3330_v30 = vsel %vm1208_vm10, %v2379_v17, %v1205_v21  ;;  %2388 = vrsqrt.f32 %v1147_v5  ;;  %vm1238_vm12 = vmor %vm1236_vm11, %vm1237_vm6  ;;  %vm1246_vm14 = vweird.f32 %v1145_v11 }
 0x24b   : > { %v1232_v40 = vmul.f32 %v2385_v56, %v1231_v12  ;;  %v3333_v42 = vsel %vm1218_vm2, %v2381_v53, %v1215_v61  ;;  %vm1256_vm8 = vweird.f32 %v1147_v5 }
 0x24c   : > { %v1223_v47 = vmul.f32 0.5, %v1222_v44 }
 0x24d   : > { %v1233_v15 = vmul.f32 0.5, %v1232_v40 }
 0x24e   : > { %v1224_v14 = vsub.f32 1.5, %v1223_v47 }
 0x24f   : > { %v2387_v38 = vpop.eup %2386  ;;  %v1234_v49 = vsub.f32 1.5, %v1233_v15 }
 0x250   : > { %v1241_v19 = vmul.f32 %v2387_v38, %v1145_v11  ;;  %v1225_v48 = vmul.f32 %v2383_v4, %v1224_v14  ;;  %v2389_v33 = vpop.eup %2388  ;;  %vm1247_vm13 = vweird.f32 %v2387_v38 }
 0x251   : > { %v1251_v25 = vmul.f32 %v2389_v33, %v1147_v5  ;;  %v1235_v34 = vmul.f32 %v2385_v56, %v1234_v49  ;;  %vm1248_vm15 = vmor %vm1246_vm14, %vm1247_vm13  ;;  %vm1257_vm7 = vweird.f32 %v2389_v33 }
 0x252   : > { %1323 = vxpose.xlu1.b32.cont [4/16] %v3327_v46, 128  ;;  %v1242_v20 = vmul.f32 %v2387_v38, %v1241_v19  ;;  %v3336_v23 = vsel %vm1228_vm5, %v2383_v4, %v1225_v48  ;;  %vm1258_vm9 = vmor %vm1256_vm8, %vm1257_vm7 }
 0x253   : > { %v1252_v32 = vmul.f32 %v2389_v33, %v1251_v25  ;;  %v3339_v41 = vsel %vm1238_vm12, %v2385_v56, %v1235_v34 }
 0x254   : > { %v1243_v13 = vmul.f32 0.5, %v1242_v20 }
 0x255   : > { %v1253_v1 = vmul.f32 0.5, %v1252_v32  ;;  %v1399_v32 = vld [vmem:[%s3359_s15 + $0x78] sm:$0xff] }
 0x256   : > { %v1244_v36 = vsub.f32 1.5, %v1243_v13  ;;  %1417 = vmatpush.msra.mxu0 %v1399_v32  ;;  %2247 = vmatpush.msra.mxu2 %v1399_v32 }
 0x257   : > { %v1254_v51 = vsub.f32 1.5, %v1253_v1 }
 0x258   : > { %v1245_v54 = vmul.f32 %v2387_v38, %v1244_v36 }
 0x259   : > { %v1151_v17 = vpop.xlane.xlu0 %1150  ;;  %v1255_v2 = vmul.f32 %v2389_v33, %v1254_v51 }
 0x25a   : > { %1324 = vxpose.xlu1.b32.cont [5/16] %v3330_v30, 128  ;;  %v3342_v63 = vsel %vm1248_vm15, %v2387_v38, %v1245_v54  ;;  %vm1276_vm3 = vweird.f32 %v1151_v17  ;;  %v1396_v54 = vld [vmem:[%s3359_s15 + $0x60] sm:$0xff] }
 0x25b   : > { %v3345_v21 = vsel %vm1258_vm9, %v2389_v33, %v1255_v2  ;;  %v1392_v2 = vld [vmem:[%s3359_s15 + $0x40] sm:$0xff] }
 0x261   : > { %v1153_v53 = vpop.xlane.xlu1 %1152 }
 0x262   : > { %1325 = vxpose.xlu1.b32.cont [6/16] %v3333_v42, 128  ;;  %vm1286_vm6 = vweird.f32 %v1153_v53 }
 0x269   : > { %v1155_v6 = vpop.xlane.xlu0 %1154 }
 0x26a   : > { %1326 = vxpose.xlu1.b32.cont [7/16] %v3336_v23, 128  ;;  %vm1296_vm13 = vweird.f32 %v1155_v6 }
 0x26d   : > { %v1149_v29 = vpop.xlane.xlu2 %1148 }
 0x26e   : > { %2390 = vrsqrt.f32 %v1149_v29  ;;  %vm1266_vm0 = vweird.f32 %v1149_v29 }
 0x26f   : > { %2392 = vrsqrt.f32 %v1151_v17 }
 0x270   : > { %2394 = vrsqrt.f32 %v1153_v53 }
 0x271   : > { %2396 = vrsqrt.f32 %v1155_v6  ;;  %v1157_v61 = vpop.xlane.xlu1 %1156 }
 0x272   : > { %1327 = vxpose.xlu1.b32.cont [8/16] %v3339_v41, 128  ;;  %2398 = vrsqrt.f32 %v1157_v61  ;;  %vm1306_vm7 = vweird.f32 %v1157_v61 }
 0x274   : > { %v2391_v62 = vpop.eup %2390 }
 0x275   : > { %v1261_v50 = vmul.f32 %v2391_v62, %v1149_v29  ;;  %v2393_v0 = vpop.eup %2392  ;;  %vm1267_vm10 = vweird.f32 %v2391_v62 }
 0x276   : > { %v1271_v24 = vmul.f32 %v2393_v0, %v1151_v17  ;;  %v2395_v8 = vpop.eup %2394  ;;  %vm1268_vm1 = vmor %vm1266_vm0, %vm1267_vm10  ;;  %vm1277_vm2 = vweird.f32 %v2393_v0  ;;  %v1398_v17 = vld [vmem:[%s3359_s15 + $0x70] sm:$0xff] }
 0x277   : > { %v1262_v55 = vmul.f32 %v2391_v62, %v1261_v50  ;;  %v1281_v11 = vmul.f32 %v2395_v8, %v1153_v53  ;;  %v2397_v14 = vpop.eup %2396  ;;  %vm1278_vm4 = vmor %vm1276_vm3, %vm1277_vm2  ;;  %vm1287_vm5 = vweird.f32 %v2395_v8  ;;  %v1397_v50 = vld [vmem:[%s3359_s15 + $0x68] sm:$0xff]  ;;  %1418 = vmatpush.msra.mxu0 %v1398_v17  ;;  %2248 = vmatpush.msra.mxu2 %v1398_v17  ;;  %v1354_v17 = vmul.f32 %v3324_v52, %v3167_v45 }
 0x278   : > { %v1272_v4 = vmul.f32 %v2393_v0, %v1271_v24  ;;  %v1291_v38 = vmul.f32 %v2397_v14, %v1155_v6  ;;  %v2399_v20 = vpop.eup %2398  ;;  %vm1288_vm11 = vmor %vm1286_vm6, %vm1287_vm5  ;;  %vm1297_vm12 = vweird.f32 %v2397_v14  ;;  %v1357_v45 = vmul.f32 %v3333_v42, %v3198_v18 }
 0x279   : > { %v1263_v35 = vmul.f32 0.5, %v1262_v55  ;;  %v1282_v47 = vmul.f32 %v2395_v8, %v1281_v11  ;;  %v1301_v13 = vmul.f32 %v2399_v20, %v1157_v61  ;;  %vm1298_vm14 = vmor %vm1296_vm13, %vm1297_vm12  ;;  %1419 = vmatpush.msra.mxu0 %v1397_v50  ;;  %2249 = vmatpush.msra.mxu2 %v1397_v50  ;;  %v1395_v55 = vld [vmem:[%s3359_s15 + $0x58] sm:$0xff]  ;;  %vm1307_vm15 = vweird.f32 %v2399_v20 }
 0x27a   : > { %1328 = vxpose.xlu1.b32.cont [9/16] %v3342_v63, 128  ;;  %v1273_v44 = vmul.f32 0.5, %v1272_v4  ;;  %v1292_v48 = vmul.f32 %v2397_v14, %v1291_v38  ;;  %vm1308_vm8 = vmor %vm1306_vm7, %vm1307_vm15  ;;  %v1385_v38 = vld [vmem:[%s3359_s15 + $0x8] sm:$0xff]  ;;  %v1360_v18 = vmul.f32 %v3342_v63, %v3227_v37  ;;  %v1412_v37 = vld [vmem:[%s3812_s2 + $0x60] sm:$0xff]  ;;  %vm1997_vm2 = vcmask 1041409  }
 0x27b   : > { %v1264_v27 = vsub.f32 1.5, %v1263_v35  ;;  %v1283_v5 = vmul.f32 0.5, %v1282_v47  ;;  %v1302_v34 = vmul.f32 %v2399_v20, %v1301_v13  ;;  %1420 = vmatpush.msra.mxu0 %v1396_v54  ;;  %2250 = vmatpush.msra.mxu2 %v1396_v54  ;;  %v1393_v35 = vld [vmem:[%s3359_s15 + $0x48] sm:$0xff]  ;;  %v1387_v47 = vld [vmem:[%s3359_s15 + $0x18] sm:$0xff]  ;;  %vm1999_vm3 = vcmask 1042434  }
 0x27c   : > { %v1274_v12 = vsub.f32 1.5, %v1273_v44  ;;  %v1293_v33 = vmul.f32 0.5, %v1292_v48  ;;  %v1389_v44 = vld [vmem:[%s3359_s15 + $0x28] sm:$0xff]  ;;  %vm2003_vm5 = vcmask 1044484   ;;  %vm2005_vm6 = vcmask 1045509  }
 0x27d   : > { %v1265_v56 = vmul.f32 %v2391_v62, %v1264_v27  ;;  %v1284_v19 = vsub.f32 1.5, %v1283_v5  ;;  %1421 = vmatpush.msra.mxu0 %v1395_v55  ;;  %2251 = vmatpush.msra.mxu2 %v1395_v55  ;;  %v1391_v27 = vld [vmem:[%s3359_s15 + $0x38] sm:$0xff]  ;;  %vm2009_vm12 = vcmask 1047559  }
 0x27e   : > { %v1275_v15 = vmul.f32 %v2393_v0, %v1274_v12  ;;  %v1294_v29 = vsub.f32 1.5, %v1293_v33  ;;  %v1352_v33 = vmul.f32 %v3318_v16, %v3155_v10  ;;  %v1355_v10 = vmul.f32 %v3327_v46, %v3182_v59 }
 0x27f   : > { %v3348_v40 = vsel %vm1268_vm1, %v2391_v62, %v1265_v56  ;;  %v1285_v25 = vmul.f32 %v2395_v8, %v1284_v19  ;;  %v1303_v62 = vmul.f32 0.5, %v1302_v34  ;;  %v1388_v56 = vld [vmem:[%s3359_s15 + $0x20] sm:$0xff]  ;;  %v1358_v59 = vmul.f32 %v3336_v23, %v3216_v26  ;;  %v1415_v26 = vld [vmem:[%s3812_s2 + $0x78] sm:$0xff]  ;;  %v1413_v23 = vld [vmem:[%s3812_s2 + $0x68] sm:$0xff] }
 0x280   : > { %v3351_v49 = vsel %vm1278_vm4, %v2393_v0, %v1275_v15  ;;  %v1295_v1 = vmul.f32 %v2397_v14, %v1294_v29  ;;  %v1394_v0 = vld [vmem:[%s3359_s15 + $0x50] sm:$0xff]  ;;  %v1353_v29 = vmul.f32 %v3321_v7, %v3180_v58  ;;  %v1356_v58 = vmul.f32 %v3330_v30, %v3200_v9  ;;  %1485 = vmatpush.msra.mxu1 %v1415_v26 }
 0x281   : > { %v3361_v36 = vsel %vm1288_vm11, %v2395_v8, %v1285_v25  ;;  %v1304_v51 = vsub.f32 1.5, %v1303_v62  ;;  %1422 = vmatpush.msra.mxu0 %v1394_v0  ;;  %2252 = vmatpush.msra.mxu2 %v1394_v0  ;;  %v1390_v8 = vld [vmem:[%s3359_s15 + $0x30] sm:$0xff]  ;;  %v1359_v9 = vmul.f32 %v3339_v41, %v3213_v22  ;;  %v1361_v41 = vmul.f32 %v3345_v21, %v3230_v28  ;;  %v1409_v28 = vld [vmem:[%s3812_s2 + $0x48] sm:$0xff] }
 0x282   : > { %1329 = vxpose.xlu1.b32.cont [10/16] %v3345_v21, 128  ;;  %v3368_v53 = vsel %vm1298_vm14, %v2397_v14, %v1295_v1  ;;  %v1386_v14 = vld [vmem:[%s3359_s15 + $0x10] sm:$0xff]  ;;  %2263 = vmatpush.msra.mxu3 %v1415_v26  ;;  %v1408_v21 = vld [vmem:[%s3812_s2 + $0x40] sm:$0xff]  ;;  %vm2001_vm4 = vcmask 1043459   ;;  %vm2007_vm11 = vcmask 1046534  }
 0x283   : > { %v1305_v24 = vmul.f32 %v2399_v20, %v1304_v51  ;;  %1423 = vmatpush.msra.mxu0 %v1393_v35  ;;  %2253 = vmatpush.msra.mxu2 %v1393_v35  ;;  %v1414_v22 = vld [vmem:[%s3812_s2 + $0x70] sm:$0xff] }
 0x284   : > { %1486 = vmatpush.msra.mxu1 %v1414_v22  ;;  %2264 = vmatpush.msra.mxu3 %v1414_v22 }
 0x285   : > { %v3375_v6 = vsel %vm1308_vm8, %v2399_v20, %v1305_v24  ;;  %1424 = vmatpush.msra.mxu0 %v1392_v2  ;;  %2254 = vmatpush.msra.mxu2 %v1392_v2  ;;  %v1384_v20 = vld [vmem:[%s3359_s15] sm:$0xff]  ;;  %v1411_v2 = vld [vmem:[%s3812_s2 + $0x58] sm:$0xff] }
 0x286   : > { %1487 = vmatpush.msra.mxu1 %v1413_v23  ;;  %2265 = vmatpush.msra.mxu3 %v1413_v23 }
 0x287   : > { %1425 = vmatpush.msra.mxu0 %v1391_v27  ;;  %2255 = vmatpush.msra.mxu2 %v1391_v27  ;;  %v1362_v27 = vmul.f32 %v3348_v40, %v3294_v39  ;;  %v1405_v39 = vld [vmem:[%s3812_s2 + $0x28] sm:$0xff] }
 0x288   : > { %1488 = vmatpush.msra.mxu1 %v1412_v37  ;;  %2266 = vmatpush.msra.mxu3 %v1412_v37 }
 0x289   : > { %1426 = vmatpush.msra.mxu0 %v1390_v8  ;;  %2256 = vmatpush.msra.mxu2 %v1390_v8 }
 0x28a   : > { %1330 = vxpose.xlu1.b32.cont [11/16] %v3348_v40, 128  ;;  %1489 = vmatpush.msra.mxu1 %v1411_v2  ;;  %v1404_v40 = vld [vmem:[%s3812_s2 + $0x20] sm:$0xff] }
 0x28b   : > { %1427 = vmatpush.msra.mxu0 %v1389_v44  ;;  %2257 = vmatpush.msra.mxu2 %v1389_v44 }
 0x28c   : > { %2267 = vmatpush.msra.mxu3 %v1411_v2 }
 0x28d   : > { %1428 = vmatpush.msra.mxu0 %v1388_v56  ;;  %2258 = vmatpush.msra.mxu2 %v1388_v56  ;;  %v1406_v56 = vld [vmem:[%s3812_s2 + $0x30] sm:$0xff] }
 0x28f   : > { %1429 = vmatpush.msra.mxu0 %v1387_v47  ;;  %2259 = vmatpush.msra.mxu2 %v1387_v47 }
 0x291   : > { %1430 = vmatpush.msra.mxu0 %v1386_v14  ;;  %2260 = vmatpush.msra.mxu2 %v1386_v14  ;;  %v1403_v14 = vld [vmem:[%s3812_s2 + $0x18] sm:$0xff] }
 0x292   : > { %1331 = vxpose.xlu1.b32.cont [12/16] %v3351_v49, 128 }
 0x293   : > { %1431 = vmatpush.msra.mxu0 %v1385_v38  ;;  %2261 = vmatpush.msra.mxu2 %v1385_v38 }
 0x295   : > { %1432 = vmatpush.msra.mxu0 %v1384_v20  ;;  %2262 = vmatpush.msra.mxu2 %v1384_v20  ;;  %v1365_v20 = vmul.f32 %v3368_v53, %v3285_v60 }
 0x29a   : > { %1332 = vxpose.xlu1.b32.cont [13/16] %v3361_v36, 128 }
 0x2a2   : > { %1333 = vxpose.xlu1.b32.cont [14/16] %v3368_v53, 128 }
 0x2a8   : > { %v1159_v4 = vpop.xlane.xlu0 %1158 }
 0x2a9   : > { %2400 = vrsqrt.f32 %v1159_v4  ;;  %vm1316_vm10 = vweird.f32 %v1159_v4 }
 0x2aa   : > { %1334 = vxpose.xlu1.b32.cont [15/16] %v3375_v6, 128 }
 0x2af   : > { %v2401_v11 = vpop.eup %2400 }
 0x2b0   : > { %v1311_v12 = vmul.f32 %v2401_v11, %v1159_v4  ;;  %vm1317_vm9 = vweird.f32 %v2401_v11  ;;  %v1410_v4 = vld [vmem:[%s3812_s2 + $0x50] sm:$0xff] }
 0x2b1   : > { %vm1318_vm0 = vmor %vm1316_vm10, %vm1317_vm9  ;;  %1490 = vmatpush.msra.mxu1 %v1410_v4  ;;  %2268 = vmatpush.msra.mxu3 %v1410_v4 }
 0x2b2   : > { %v1312_v61 = vmul.f32 %v2401_v11, %v1311_v12  ;;  %v1363_v12 = vmul.f32 %v3351_v49, %v3243_v57  ;;  %v1401_v57 = vld [vmem:[%s3812_s2 + $0x8] sm:$0xff]  ;;  %v1364_v49 = vmul.f32 %v3361_v36, %v3264_v31  ;;  %v1366_v31 = vmul.f32 %v3375_v6, %v3300_v43 }
 0x2b3   : > { %1491 = vmatpush.msra.mxu1 %v1409_v28  ;;  %2269 = vmatpush.msra.mxu3 %v1409_v28 }
 0x2b4   : > { %v1313_v5 = vmul.f32 0.5, %v1312_v61 }
 0x2b5   : > { %1492 = vmatpush.msra.mxu1 %v1408_v21  ;;  %2270 = vmatpush.msra.mxu3 %v1408_v21 }
 0x2b6   : > { %v1314_v15 = vsub.f32 1.5, %v1313_v5  ;;  %v1402_v5 = vld [vmem:[%s3812_s2 + $0x10] sm:$0xff] }
 0x2b8   : > { %v1315_v19 = vmul.f32 %v2401_v11, %v1314_v15  ;;  %v1400_v15 = vld [vmem:[%s3812_s2] sm:$0xff] }
 0x2ba   : > { %v3385_v48 = vsel %vm1318_vm0, %v2401_v11, %v1315_v19  ;;  %v1407_v11 = vld [vmem:[%s3812_s2 + $0x38] sm:$0xff] }
 0x2bb   : > { %1335 = vxpose.xlu1.b32.end [16/16] %v3385_v48, 128  ;;  %1493 = vmatpush.msra.mxu1 %v1407_v11 }
 0x2bc   : > { %2271 = vmatpush.msra.mxu3 %v1407_v11 }
 0x2bd   : > { %1494 = vmatpush.msra.mxu1 %v1406_v56 }
 0x2be   : > { %2272 = vmatpush.msra.mxu3 %v1406_v56 }
 0x2bf   : > { %1495 = vmatpush.msra.mxu1 %v1405_v39 }
 0x2c0   : > { %2273 = vmatpush.msra.mxu3 %v1405_v39 }
 0x2c1   : > { %1496 = vmatpush.msra.mxu1 %v1404_v40 }
 0x2c2   : > { %2274 = vmatpush.msra.mxu3 %v1404_v40 }
 0x2c3   : > { %1497 = vmatpush.msra.mxu1 %v1403_v14 }
 0x2c4   : > { %2275 = vmatpush.msra.mxu3 %v1403_v14 }
 0x2c5   : > { %1498 = vmatpush.msra.mxu1 %v1402_v5 }
 0x2c6   : > { %2276 = vmatpush.msra.mxu3 %v1402_v5 }
 0x2c7   : > { %1499 = vmatpush.msra.mxu1 %v1401_v57 }
 0x2c8   : > { %2277 = vmatpush.msra.mxu3 %v1401_v57 }
 0x2c9   : > { %1500 = vmatpush.msra.mxu1 %v1400_v15 }
 0x2ca   : > { %2278 = vmatpush.msra.mxu3 %v1400_v15 }
 0x2e7   : > { %v1336_v13 = vpop.trf.xlu1 }
 0x2e8   : > { %v3391_v25 = vmul.f32 %v1352_v33, %v1336_v13 }
 0x2ea   : > { %1433 = vmatmul.f32.vlgmr.msra.gmra.mxu0 %v3391_v25 }
 0x2ef   : > { %v1337_v34 = vpop.trf.xlu1 }
 0x2f0   : > { %v3396_v32 = vmul.f32 %v1353_v29, %v1337_v34  ;;  %v1367_v34 = vmul.f32 %v3385_v48, %v3315_v3 }
 0x2f2   : > { %1436 = vmatmul.f32.gmra.mxu0 %v3396_v32 }
 0x2f7   : > { %v1338_v62 = vpop.trf.xlu1 }
 0x2f8   : > { %v3401_v1 = vmul.f32 %v1354_v17, %v1338_v62 }
 0x2fa   : > { %1439 = vmatmul.f32.gmra.mxu0 %v3401_v1 }
 0x2ff   : > { %v1339_v16 = vpop.trf.xlu1 }
 0x300   : > { %v3406_v50 = vmul.f32 %v1355_v10, %v1339_v16 }
 0x302   : > { %1442 = vmatmul.f32.gmra.mxu0 %v3406_v50 }
 0x307   : > { %v1340_v7 = vpop.trf.xlu1 }
 0x308   : > { %v3411_v54 = vmul.f32 %v1356_v58, %v1340_v7 }
 0x30a   : > { %1445 = vmatmul.f32.gmra.mxu0 %v3411_v54 }
 0x30f   : > { %v1341_v52 = vpop.trf.xlu1 }
 0x310   : > { %v3416_v51 = vmul.f32 %v1357_v45, %v1341_v52 }
 0x312   : > { %1448 = vmatmul.f32.gmra.mxu0 %v3416_v51 }
 0x317   : > { %v1342_v46 = vpop.trf.xlu1 }
 0x318   : > { %v3421_v55 = vmul.f32 %v1358_v59, %v1342_v46 }
 0x31a   : > { %1451 = vmatmul.f32.gmra.mxu0 %v3421_v55 }
 0x31f   : > { %v1343_v30 = vpop.trf.xlu1 }
 0x320   : > { %v3426_v0 = vmul.f32 %v1359_v9, %v1343_v30 }
 0x322   : > { %1454 = vmatmul.f32.gmra.mxu0 %v3426_v0 }
 0x327   : > { %v1344_v42 = vpop.trf.xlu1 }
 0x328   : > { %v3431_v24 = vmul.f32 %v1360_v18, %v1344_v42 }
 0x32a   : > { %1457 = vmatmul.f32.gmra.mxu0 %v3431_v24 }
 0x32f   : > { %v1345_v63 = vpop.trf.xlu1 }
 0x330   : > { %v3448_v35 = vmul.f32 %v1361_v41, %v1345_v63 }
 0x332   : > { %1460 = vmatmul.f32.vlgmr.msra.gmra.mxu2 %v3448_v35 }
 0x337   : > { %v1346_v8 = vpop.trf.xlu1 }
 0x338   : > { %v3465_v44 = vmul.f32 %v1362_v27, %v1346_v8  ;;  %v2365_v8 = vld [vmem:[%s3813_s3] ss:$0 sm:$0xff] }
 0x33a   : > { %1463 = vmatmul.f32.gmra.mxu2 %v3465_v44 }
 0x33f   : > { %v1347_v47 = vpop.trf.xlu1 }
 0x340   : > { %v3482_v61 = vmul.f32 %v1363_v12, %v1347_v47 }
 0x342   : > { %1466 = vmatmul.f32.gmra.mxu2 %v3482_v61 }
 0x347   : > { %v1348_v38 = vpop.trf.xlu1 }
 0x348   : > { %v3499_v19 = vmul.f32 %v1364_v49, %v1348_v38 }
 0x34a   : > { %1469 = vmatmul.f32.gmra.mxu2 %v3499_v19 }
 0x34f   : > { %v1349_v33 = vpop.trf.xlu1 }
 0x350   : > { %v3504_v13 = vmul.f32 %v1365_v20, %v1349_v33 }
 0x352   : > { %1472 = vmatmul.f32.gmra.mxu2 %v3504_v13 }
 0x357   : > { %v1350_v36 = vpop.trf.xlu1 }
 0x358   : > { %v3509_v29 = vmul.f32 %v1366_v31, %v1350_v36 }
 0x35a   : > { %1475 = vmatmul.f32.gmra.mxu2 %v3509_v29 }
 0x35f   : > { %v1351_v17 = vpop.trf.xlu1 }
 0x360   : > { %v3514_v62 = vmul.f32 %v1367_v34, %v1351_v17 }
 0x362   : > { %1478 = vmatmul.f32.gmra.mxu2 %v3514_v62 }
 0x367   : > { %v1434_v60 = vpop.f32.mrf.mxu0 }
 0x368   : > { %1501 = vmatmul.f32.vlgmr.msra.gmra.mxu1 %v1434_v60 }
 0x36f   : > { %v1437_v53 = vpop.f32.mrf.mxu0 }
 0x370   : > { %1504 = vmatmul.f32.gmra.mxu1 %v1437_v53 }
 0x377   : > { %v1440_v10 = vpop.f32.mrf.mxu0 }
 0x378   : > { %1507 = vmatmul.f32.gmra.mxu1 %v1440_v10 }
 0x37f   : > { %v1443_v43 = vpop.f32.mrf.mxu0 }
 0x380   : > { %1510 = vmatmul.f32.gmra.mxu1 %v1443_v43 }
 0x387   : > { %v1446_v6 = vpop.f32.mrf.mxu0 }
 0x388   : > { %1513 = vmatmul.f32.gmra.mxu1 %v1446_v6 }
 0x38f   : > { %v1449_v16 = vpop.f32.mrf.mxu0 }
 0x390   : > { %1516 = vmatmul.f32.gmra.mxu1 %v1449_v16 }
 0x397   : > { %v1452_v58 = vpop.f32.mrf.mxu0 }
 0x398   : > { %1519 = vmatmul.f32.gmra.mxu1 %v1452_v58 }
 0x39f   : > { %v1455_v3 = vpop.f32.mrf.mxu0 }
 0x3a0   : > { %1522 = vmatmul.f32.gmra.mxu1 %v1455_v3 }
 0x3a7   : > { %v1458_v48 = vpop.f32.mrf.mxu0 }
 0x3a8   : > { %1525 = vmatmul.f32.gmra.mxu1 %v1458_v48 }
 0x3b5   : > { %v1461_v7 = vpop.f32.mrf.mxu2 }
 0x3b6   : > { %1528 = vmatmul.f32.vlgmr.msra.gmra.mxu3 %v1461_v7 }
 0x3bd   : > { %v1464_v45 = vpop.f32.mrf.mxu2 }
 0x3be   : > { %1531 = vmatmul.f32.gmra.mxu3 %v1464_v45 }
 0x3c5   : > { %v1467_v52 = vpop.f32.mrf.mxu2 }
 0x3c6   : > { %1534 = vmatmul.f32.gmra.mxu3 %v1467_v52 }
 0x3cd   : > { %v1470_v59 = vpop.f32.mrf.mxu2 }
 0x3ce   : > { %1537 = vmatmul.f32.gmra.mxu3 %v1470_v59 }
 0x3d5   : > { %v1473_v46 = vpop.f32.mrf.mxu2 }
 0x3d6   : > { %1540 = vmatmul.f32.gmra.mxu3 %v1473_v46 }
 0x3dd   : > { %v1476_v9 = vpop.f32.mrf.mxu2 }
 0x3de   : > { %1543 = vmatmul.f32.gmra.mxu3 %v1476_v9 }
 0x3e5   : > { %v1479_v30 = vpop.f32.mrf.mxu2  ;;  %v1502_v18 = vpop.f32.mrf.mxu1 }
 0x3e6   : > { %1546 = vmatmul.f32.gmra.mxu3 %v1479_v30  ;;  %v1503_v46 = vadd.f32 %v2365_v8, %v1502_v18  ;;  %v1581_v18 = vld [vmem:[%s3814_s4 + $0x78] sm:$0xff] }
 0x3e7   : > { %1651 = vmatpush.msrb.mxu3 %v1581_v18 }
 0x3ed   : > { %v1505_v42 = vpop.f32.mrf.mxu1 }
 0x3ee   : > { %v1506_v52 = vadd.f32 %v2365_v8, %v1505_v42  ;;  %v1580_v42 = vld [vmem:[%s3814_s4 + $0x70] sm:$0xff] }
 0x3ef   : > { %1652 = vmatpush.msrb.mxu3 %v1580_v42 }
 0x3f0   : > { %v1551_v30 = vmax.f32 %v1506_v52, 0.0 }
 0x3f5   : > { %v1508_v26 = vpop.f32.mrf.mxu1 }
 0x3f6   : > { %v1509_v7 = vadd.f32 %v2365_v8, %v1508_v26  ;;  %v1579_v26 = vld [vmem:[%s3814_s4 + $0x68] sm:$0xff] }
 0x3f7   : > { %1653 = vmatpush.msrb.mxu3 %v1579_v26 }
 0x3f8   : > { %v1552_v9 = vmax.f32 %v1509_v7, 0.0 }
 0x3fd   : > { %v1511_v23 = vpop.f32.mrf.mxu1 }
 0x3fe   : > { %v1512_v3 = vadd.f32 %v2365_v8, %v1511_v23  ;;  %v1578_v23 = vld [vmem:[%s3814_s4 + $0x60] sm:$0xff] }
 0x3ff   : > { %1654 = vmatpush.msrb.mxu3 %v1578_v23 }
 0x400   : > { %v1553_v59 = vmax.f32 %v1512_v3, 0.0 }
 0x405   : > { %v1514_v63 = vpop.f32.mrf.mxu1 }
 0x406   : > { %v1515_v16 = vadd.f32 %v2365_v8, %v1514_v63  ;;  %v1575_v63 = vld [vmem:[%s3814_s4 + $0x48] sm:$0xff] }
 0x408   : > { %v1554_v45 = vmax.f32 %v1515_v16, 0.0 }
 0x40d   : > { %v1517_v4 = vpop.f32.mrf.mxu1 }
 0x40e   : > { %v1518_v43 = vadd.f32 %v2365_v8, %v1517_v4  ;;  %v1573_v4 = vld [vmem:[%s3814_s4 + $0x38] sm:$0xff] }
 0x410   : > { %v1555_v48 = vmax.f32 %v1518_v43, 0.0 }
 0x415   : > { %v1520_v21 = vpop.f32.mrf.mxu1 }
 0x416   : > { %v1521_v53 = vadd.f32 %v2365_v8, %v1520_v21  ;;  %v1571_v21 = vld [vmem:[%s3814_s4 + $0x28] sm:$0xff] }
 0x418   : > { %v1556_v58 = vmax.f32 %v1521_v53, 0.0 }
 0x41d   : > { %v1523_v11 = vpop.f32.mrf.mxu1 }
 0x41e   : > { %v1524_v17 = vadd.f32 %v2365_v8, %v1523_v11  ;;  %v1568_v11 = vld [vmem:[%s3814_s4 + $0x10] sm:$0xff] }
 0x420   : > { %v1557_v6 = vmax.f32 %v1524_v17, 0.0 }
 0x425   : > { %v1526_v20 = vpop.f32.mrf.mxu1 }
 0x426   : > { %v1527_v36 = vadd.f32 %v2365_v8, %v1526_v20 }
 0x428   : > { %v1558_v10 = vmax.f32 %v1527_v36, 0.0 }
 0x439   : > { %v1529_v22 = vpop.f32.mrf.mxu3 }
 0x43a   : > { %v1530_v33 = vadd.f32 %v2365_v8, %v1529_v22  ;;  %v1550_v22 = vmax.f32 %v1503_v46, 0.0 }
 0x43c   : > { %v1559_v60 = vmax.f32 %v1530_v33, 0.0 }
 0x441   : > { %v1532_v37 = vpop.f32.mrf.mxu3 }
 0x442   : > { %v1533_v38 = vadd.f32 %v2365_v8, %v1532_v37  ;;  %v1577_v37 = vld [vmem:[%s3814_s4 + $0x58] sm:$0xff] }
 0x443   : > { %1655 = vmatpush.msrb.mxu3 %v1577_v37 }
 0x444   : > { %v1560_v34 = vmax.f32 %v1533_v38, 0.0 }
 0x449   : > { %v1535_v41 = vpop.f32.mrf.mxu3 }
 0x44a   : > { %v1536_v57 = vadd.f32 %v2365_v8, %v1535_v41  ;;  %v1576_v41 = vld [vmem:[%s3814_s4 + $0x50] sm:$0xff] }
 0x44b   : > { %1656 = vmatpush.msrb.mxu3 %v1576_v41 }
 0x44c   : > { %v1561_v31 = vmax.f32 %v1536_v57, 0.0 }
 0x44d   : > { %1657 = vmatpush.msrb.mxu3 %v1575_v63 }
 0x451   : > { %v1538_v2 = vpop.f32.mrf.mxu3 }
 0x452   : > { %v1539_v14 = vadd.f32 %v2365_v8, %v1538_v2  ;;  %v1574_v2 = vld [vmem:[%s3814_s4 + $0x40] sm:$0xff] }
 0x453   : > { %1658 = vmatpush.msrb.mxu3 %v1574_v2 }
 0x454   : > { %v1562_v15 = vmax.f32 %v1539_v14, 0.0 }
 0x455   : > { %1659 = vmatpush.msrb.mxu3 %v1573_v4 }
 0x459   : > { %v1541_v28 = vpop.f32.mrf.mxu3 }
 0x45a   : > { %v1542_v12 = vadd.f32 %v2365_v8, %v1541_v28  ;;  %v1572_v28 = vld [vmem:[%s3814_s4 + $0x30] sm:$0xff] }
 0x45b   : > { %1660 = vmatpush.msrb.mxu3 %v1572_v28 }
 0x45c   : > { %v1563_v49 = vmax.f32 %v1542_v12, 0.0 }
 0x45d   : > { %1661 = vmatpush.msrb.mxu3 %v1571_v21 }
 0x461   : > { %v1544_v27 = vpop.f32.mrf.mxu3 }
 0x462   : > { %v1545_v39 = vadd.f32 %v2365_v8, %v1544_v27  ;;  %v1570_v27 = vld [vmem:[%s3814_s4 + $0x20] sm:$0xff] }
 0x463   : > { %1662 = vmatpush.msrb.mxu3 %v1570_v27 }
 0x464   : > { %v1564_v5 = vmax.f32 %v1545_v39, 0.0  ;;  %v1566_v39 = vld [vmem:[%s3814_s4] sm:$0xff] }
 0x469   : > { %v1547_v56 = vpop.f32.mrf.mxu3 }
 0x46a   : > { %v1548_v40 = vadd.f32 %v2365_v8, %v1547_v56  ;;  %v1569_v8 = vld [vmem:[%s3814_s4 + $0x18] sm:$0xff]  ;;  %v1567_v56 = vld [vmem:[%s3814_s4 + $0x8] sm:$0xff] }
 0x46b   : > { %1663 = vmatpush.msrb.mxu3 %v1569_v8 }
 0x46c   : > { %v1565_v47 = vmax.f32 %v1548_v40, 0.0 }
 0x46d   : > { %1664 = vmatpush.msrb.mxu3 %v1568_v11 }
 0x46e   : > { %1583 = vmatpush.msrb.mxu2 %v1565_v47 }
 0x46f   : > { %1665 = vmatpush.msrb.mxu3 %v1567_v56 }
 0x470   : > { %1584 = vmatpush.msrb.mxu2 %v1564_v5 }
 0x471   : > { %1666 = vmatpush.msrb.mxu3 %v1566_v39 }
 0x472   : > { %1585 = vmatpush.msrb.mxu2 %v1563_v49 }
 0x474   : > { %1586 = vmatpush.msrb.mxu2 %v1562_v15 }
 0x476   : > { %1587 = vmatpush.msrb.mxu2 %v1561_v31 }
 0x478   : > { %1588 = vmatpush.msrb.mxu2 %v1560_v34 }
 0x47a   : > { %1589 = vmatpush.msrb.mxu2 %v1559_v60 }
 0x47c   : > { %1590 = vmatpush.msrb.mxu2 %v1558_v10 }
 0x47e   : > { %1591 = vmatpush.msrb.mxu2 %v1557_v6 }
 0x480   : > { %1592 = vmatpush.msrb.mxu2 %v1556_v58 }
 0x482   : > { %1593 = vmatpush.msrb.mxu2 %v1555_v48 }
 0x484   : > { %1594 = vmatpush.msrb.mxu2 %v1554_v45 }
 0x486   : > { %1595 = vmatpush.msrb.mxu2 %v1553_v59 }
 0x488   : > { %1596 = vmatpush.msrb.mxu2 %v1552_v9 }
 0x48a   : > { %1597 = vmatpush.msrb.mxu2 %v1551_v30 }
 0x48c   : > { %1598 = vmatpush.msrb.mxu2 %v1550_v22  ;;  %v2366_v22 = vld [vmem:[#allocation2] ss:$0 sm:$0xff] }
 0x48d   : > { %1599 = vmatmul.f32.vlgmr.msrb.gmra.mxu2 %v3391_v25 }
 0x495   : > { %1602 = vmatmul.f32.gmra.mxu2 %v3396_v32 }
 0x49d   : > { %1605 = vmatmul.f32.gmra.mxu2 %v3401_v1 }
 0x4a5   : > { %1608 = vmatmul.f32.gmra.mxu2 %v3406_v50 }
 0x4ad   : > { %1611 = vmatmul.f32.gmra.mxu2 %v3411_v54 }
 0x4b5   : > { %1614 = vmatmul.f32.gmra.mxu2 %v3416_v51 }
 0x4bd   : > { %1617 = vmatmul.f32.gmra.mxu2 %v3421_v55 }
 0x4c5   : > { %1620 = vmatmul.f32.gmra.mxu2 %v3426_v0 }
 0x4cd   : > { %1623 = vmatmul.f32.gmra.mxu2 %v3431_v24 }
 0x4d5   : > { %1626 = vmatmul.f32.gmra.mxu2 %v3448_v35 }
 0x4dd   : > { %1629 = vmatmul.f32.gmra.mxu2 %v3465_v44 }
 0x4e5   : > { %1632 = vmatmul.f32.gmra.mxu2 %v3482_v61 }
 0x4ed   : > { %1635 = vmatmul.f32.gmra.mxu2 %v3499_v19 }
 0x4f5   : > { %1638 = vmatmul.f32.gmra.mxu2 %v3504_v13 }
 0x4fd   : > { %1641 = vmatmul.f32.gmra.mxu2 %v3509_v29 }
 0x505   : > { %1644 = vmatmul.f32.gmra.mxu2 %v3514_v62 }
 0x510   : > { %v1600_v40 = vpop.f32.mrf.mxu2 }
 0x511   : > { %1667 = vmatmul.f32.vlgmr.msrb.gmra.mxu3 %v1600_v40 }
 0x518   : > { %v1603_v12 = vpop.f32.mrf.mxu2 }
 0x519   : > { %1670 = vmatmul.f32.gmra.mxu3 %v1603_v12 }
 0x520   : > { %v1606_v47 = vpop.f32.mrf.mxu2 }
 0x521   : > { %1673 = vmatmul.f32.gmra.mxu3 %v1606_v47 }
 0x528   : > { %v1609_v14 = vpop.f32.mrf.mxu2 }
 0x529   : > { %1676 = vmatmul.f32.gmra.mxu3 %v1609_v14 }
 0x530   : > { %v1612_v5 = vpop.f32.mrf.mxu2 }
 0x531   : > { %1679 = vmatmul.f32.gmra.mxu3 %v1612_v5 }
 0x538   : > { %v1615_v57 = vpop.f32.mrf.mxu2 }
 0x539   : > { %1682 = vmatmul.f32.gmra.mxu3 %v1615_v57 }
 0x540   : > { %v1618_v49 = vpop.f32.mrf.mxu2 }
 0x541   : > { %1685 = vmatmul.f32.gmra.mxu3 %v1618_v49 }
 0x548   : > { %v1621_v38 = vpop.f32.mrf.mxu2 }
 0x549   : > { %1688 = vmatmul.f32.gmra.mxu3 %v1621_v38 }
 0x550   : > { %v1624_v15 = vpop.f32.mrf.mxu2 }
 0x551   : > { %1691 = vmatmul.f32.gmra.mxu3 %v1624_v15 }
 0x558   : > { %v1627_v20 = vpop.f32.mrf.mxu2 }
 0x559   : > { %1694 = vmatmul.f32.gmra.mxu3 %v1627_v20 }
 0x560   : > { %v1630_v33 = vpop.f32.mrf.mxu2 }
 0x561   : > { %1697 = vmatmul.f32.gmra.mxu3 %v1630_v33 }
 0x568   : > { %v1633_v31 = vpop.f32.mrf.mxu2 }
 0x569   : > { %1700 = vmatmul.f32.gmra.mxu3 %v1633_v31 }
 0x570   : > { %v1636_v36 = vpop.f32.mrf.mxu2 }
 0x571   : > { %1703 = vmatmul.f32.gmra.mxu3 %v1636_v36 }
 0x578   : > { %v1639_v34 = vpop.f32.mrf.mxu2 }
 0x579   : > { %1706 = vmatmul.f32.gmra.mxu3 %v1639_v34 }
 0x580   : > { %v1642_v17 = vpop.f32.mrf.mxu2 }
 0x581   : > { %1709 = vmatmul.f32.gmra.mxu3 %v1642_v17 }
 0x588   : > { %v1645_v60 = vpop.f32.mrf.mxu2 }
 0x589   : > { %1712 = vmatmul.f32.gmra.mxu3 %v1645_v60 }
 0x594   : > { %v1668_v53 = vpop.f32.mrf.mxu3 }
 0x595   : > { %v1669_v34 = vadd.f32 %v2366_v22, %v1668_v53  ;;  %v1747_v53 = vld [vmem:[%s3816_s6 + $0x78] sm:$0xff] }
 0x596   : > { %1817 = vmatpush.msrb.mxu1 %v1747_v53 }
 0x59c   : > { %v1671_v10 = vpop.f32.mrf.mxu3 }
 0x59d   : > { %v1672_v31 = vadd.f32 %v2366_v22, %v1671_v10  ;;  %v1736_v10 = vld [vmem:[%s3816_s6 + $0x20] sm:$0xff] }
 0x59f   : > { %v1717_v60 = vmax.f32 %v1672_v31, 0.0 }
 0x5a4   : > { %v1674_v43 = vpop.f32.mrf.mxu3 }
 0x5a5   : > { %v1675_v20 = vadd.f32 %v2366_v22, %v1674_v43  ;;  %v1735_v43 = vld [vmem:[%s3816_s6 + $0x18] sm:$0xff] }
 0x5a7   : > { %v1718_v17 = vmax.f32 %v1675_v20, 0.0 }
 0x5ac   : > { %v1677_v6 = vpop.f32.mrf.mxu3 }
 0x5ad   : > { %v1678_v38 = vadd.f32 %v2366_v22, %v1677_v6  ;;  %v1733_v6 = vld [vmem:[%s3816_s6 + $0x8] sm:$0xff] }
 0x5af   : > { %v1719_v36 = vmax.f32 %v1678_v38, 0.0 }
 0x5b4   : > { %v1680_v16 = vpop.f32.mrf.mxu3 }
 0x5b5   : > { %v1681_v57 = vadd.f32 %v2366_v22, %v1680_v16  ;;  %v1732_v16 = vld [vmem:[%s3816_s6] sm:$0xff] }
 0x5b7   : > { %v1720_v33 = vmax.f32 %v1681_v57, 0.0  ;;  %v1984_v57 = vld [vmem:[%s3818_s8 + $0x78] sm:$0xff] }
 0x5b8   : > { %2012 = vmatpush.msra.mxu2 %v1984_v57  ;;  %v1975_v57 = vld [vmem:[%s3818_s8 + $0x30] sm:$0xff] }
 0x5bc   : > { %v1683_v58 = vpop.f32.mrf.mxu3 }
 0x5bd   : > { %v1684_v14 = vadd.f32 %v2366_v22, %v1683_v58  ;;  %v1716_v58 = vmax.f32 %v1669_v34, 0.0 }
 0x5bf   : > { %v1721_v15 = vmax.f32 %v1684_v14, 0.0 }
 0x5c4   : > { %v1686_v3 = vpop.f32.mrf.mxu3 }
 0x5c5   : > { %v1687_v12 = vadd.f32 %v2366_v22, %v1686_v3 }
 0x5c7   : > { %v1722_v49 = vmax.f32 %v1687_v12, 0.0 }
 0x5cc   : > { %v1689_v48 = vpop.f32.mrf.mxu3 }
 0x5cd   : > { %v1690_v39 = vadd.f32 %v2366_v22, %v1689_v48 }
 0x5cf   : > { %v1723_v5 = vmax.f32 %v1690_v39, 0.0 }
 0x5d4   : > { %v1692_v7 = vpop.f32.mrf.mxu3 }
 0x5d5   : > { %v1693_v11 = vadd.f32 %v2366_v22, %v1692_v7 }
 0x5d7   : > { %v1724_v47 = vmax.f32 %v1693_v11, 0.0 }
 0x5dc   : > { %v1695_v45 = vpop.f32.mrf.mxu3 }
 0x5dd   : > { %v1696_v27 = vadd.f32 %v2366_v22, %v1695_v45 }
 0x5df   : > { %v1725_v40 = vmax.f32 %v1696_v27, 0.0 }
 0x5e4   : > { %v1698_v52 = vpop.f32.mrf.mxu3 }
 0x5e5   : > { %v1699_v28 = vadd.f32 %v2366_v22, %v1698_v52 }
 0x5e7   : > { %v1726_v56 = vmax.f32 %v1699_v28, 0.0  ;;  %v2584_v28 = vmov 16.0  }
 0x5e8   : > { %2402 = vrcp.f32 %v2584_v28 }
 0x5ec   : > { %v1701_v59 = vpop.f32.mrf.mxu3 }
 0x5ed   : > { %v1702_v2 = vadd.f32 %v2366_v22, %v1701_v59 }
 0x5ef   : > { %v1727_v8 = vmax.f32 %v1702_v2, 0.0 }
 0x5f4   : > { %v1704_v46 = vpop.f32.mrf.mxu3 }
 0x5f5   : > { %v1705_v41 = vadd.f32 %v2366_v22, %v1704_v46 }
 0x5f7   : > { %v1728_v21 = vmax.f32 %v1705_v41, 0.0 }
 0x5fc   : > { %v1707_v9 = vpop.f32.mrf.mxu3 }
 0x5fd   : > { %v1708_v23 = vadd.f32 %v2366_v22, %v1707_v9 }
 0x5ff   : > { %v1729_v4 = vmax.f32 %v1708_v23, 0.0 }
 0x604   : > { %v1710_v30 = vpop.f32.mrf.mxu3 }
 0x605   : > { %v1711_v42 = vadd.f32 %v2366_v22, %v1710_v30 }
 0x607   : > { %v1730_v63 = vmax.f32 %v1711_v42, 0.0 }
 0x60c   : > { %v1713_v18 = vpop.f32.mrf.mxu3 }
 0x60d   : > { %v1714_v26 = vadd.f32 %v2366_v22, %v1713_v18 }
 0x60f   : > { %v1731_v37 = vmax.f32 %v1714_v26, 0.0  ;;  %v3648_v26 = vld [vmem:[#allocation5] ss:$0 sm:$0xff] }
 0x611   : > { %1749 = vmatpush.msrb.mxu0 %v1731_v37 }
 0x613   : > { %1750 = vmatpush.msrb.mxu0 %v1730_v63 }
 0x615   : > { %1751 = vmatpush.msrb.mxu0 %v1729_v4 }
 0x617   : > { %1752 = vmatpush.msrb.mxu0 %v1728_v21 }
 0x619   : > { %1753 = vmatpush.msrb.mxu0 %v1727_v8  ;;  %v2403_v8 = vpop.eup %2402 }
 0x61a   : > { %v1955_v39 = vmul.f32 16.0, %v2403_v8  ;;  %vm1959_vm1 = vweird.f32 %v2403_v8 }
 0x61b   : > { %1754 = vmatpush.msrb.mxu0 %v1726_v56 }
 0x61d   : > { %1755 = vmatpush.msrb.mxu0 %v1725_v40 }
 0x61f   : > { %1756 = vmatpush.msrb.mxu0 %v1724_v47 }
 0x621   : > { %1757 = vmatpush.msrb.mxu0 %v1723_v5 }
 0x623   : > { %1758 = vmatpush.msrb.mxu0 %v1722_v49  ;;  %v1956_v49 = vsub.f32 1.0, %v1955_v39 }
 0x625   : > { %1759 = vmatpush.msrb.mxu0 %v1721_v15 }
 0x627   : > { %1760 = vmatpush.msrb.mxu0 %v1720_v33  ;;  %v1957_v33 = vmul.f32 %v2403_v8, %v1956_v49 }
 0x629   : > { %1761 = vmatpush.msrb.mxu0 %v1719_v36 }
 0x62b   : > { %1762 = vmatpush.msrb.mxu0 %v1718_v17 }
 0x62d   : > { %1763 = vmatpush.msrb.mxu0 %v1717_v60  ;;  %v1958_v60 = vadd.f32 %v2403_v8, %v1957_v33 }
 0x62f   : > { %1764 = vmatpush.msrb.mxu0 %v1716_v58 }
 0x630   : > { %1765 = vmatmul.f32.vlgmr.msrb.gmra.mxu0 %v3391_v25  ;;  %v1746_v25 = vld [vmem:[%s3816_s6 + $0x70] sm:$0xff] }
 0x631   : > { %1818 = vmatpush.msrb.mxu1 %v1746_v25 }
 0x638   : > { %1768 = vmatmul.f32.gmra.mxu0 %v3396_v32  ;;  %v1745_v32 = vld [vmem:[%s3816_s6 + $0x68] sm:$0xff] }
 0x639   : > { %1819 = vmatpush.msrb.mxu1 %v1745_v32 }
 0x640   : > { %1771 = vmatmul.f32.gmra.mxu0 %v3401_v1  ;;  %v1744_v1 = vld [vmem:[%s3816_s6 + $0x60] sm:$0xff] }
 0x641   : > { %1820 = vmatpush.msrb.mxu1 %v1744_v1  ;;  %v3658_v1 = vsel %vm1959_vm1, %v2403_v8, %v1958_v60  ;;  %v1978_v8 = vld [vmem:[%s3818_s8 + $0x48] sm:$0xff] }
 0x648   : > { %1774 = vmatmul.f32.gmra.mxu0 %v3406_v50  ;;  %v1743_v50 = vld [vmem:[%s3816_s6 + $0x58] sm:$0xff] }
 0x649   : > { %1821 = vmatpush.msrb.mxu1 %v1743_v50 }
 0x650   : > { %1777 = vmatmul.f32.gmra.mxu0 %v3411_v54  ;;  %v1742_v54 = vld [vmem:[%s3816_s6 + $0x50] sm:$0xff] }
 0x651   : > { %1822 = vmatpush.msrb.mxu1 %v1742_v54 }
 0x658   : > { %1780 = vmatmul.f32.gmra.mxu0 %v3416_v51  ;;  %v1741_v51 = vld [vmem:[%s3816_s6 + $0x48] sm:$0xff] }
 0x659   : > { %1823 = vmatpush.msrb.mxu1 %v1741_v51 }
 0x660   : > { %1783 = vmatmul.f32.gmra.mxu0 %v3421_v55  ;;  %v1740_v55 = vld [vmem:[%s3816_s6 + $0x40] sm:$0xff] }
 0x661   : > { %1824 = vmatpush.msrb.mxu1 %v1740_v55 }
 0x668   : > { %1786 = vmatmul.f32.gmra.mxu0 %v3426_v0  ;;  %v1739_v0 = vld [vmem:[%s3816_s6 + $0x38] sm:$0xff] }
 0x669   : > { %1825 = vmatpush.msrb.mxu1 %v1739_v0 }
 0x670   : > { %1789 = vmatmul.f32.gmra.mxu0 %v3431_v24  ;;  %v1738_v24 = vld [vmem:[%s3816_s6 + $0x30] sm:$0xff] }
 0x671   : > { %1826 = vmatpush.msrb.mxu1 %v1738_v24 }
 0x678   : > { %1792 = vmatmul.f32.gmra.mxu0 %v3448_v35  ;;  %v1737_v35 = vld [vmem:[%s3816_s6 + $0x28] sm:$0xff] }
 0x679   : > { %1827 = vmatpush.msrb.mxu1 %v1737_v35 }
 0x67b   : > { %1828 = vmatpush.msrb.mxu1 %v1736_v10  ;;  %v1983_v10 = vld [vmem:[%s3818_s8 + $0x70] sm:$0xff] }
 0x67c   : > { %2013 = vmatpush.msra.mxu2 %v1983_v10  ;;  %v2048_v10 = vld [vmem:[%s3820_s10 + $0x78] sm:$0xff] }
 0x67d   : > { %1829 = vmatpush.msrb.mxu1 %v1735_v43  ;;  %v1982_v43 = vld [vmem:[%s3818_s8 + $0x68] sm:$0xff]  ;;  %2053 = vmatpush.msra.mxu3 %v2048_v10 }
 0x67e   : > { %2014 = vmatpush.msra.mxu2 %v1982_v43  ;;  %v2047_v43 = vld [vmem:[%s3820_s10 + $0x70] sm:$0xff] }
 0x67f   : > { %2054 = vmatpush.msra.mxu3 %v2047_v43 }
 0x680   : > { %1795 = vmatmul.f32.gmra.mxu0 %v3465_v44  ;;  %v1734_v44 = vld [vmem:[%s3816_s6 + $0x10] sm:$0xff] }
 0x681   : > { %1830 = vmatpush.msrb.mxu1 %v1734_v44 }
 0x683   : > { %1831 = vmatpush.msrb.mxu1 %v1733_v6 }
 0x685   : > { %1832 = vmatpush.msrb.mxu1 %v1732_v16 }
 0x688   : > { %1798 = vmatmul.f32.gmra.mxu0 %v3482_v61 }
 0x690   : > { %1801 = vmatmul.f32.gmra.mxu0 %v3499_v19 }
 0x698   : > { %1804 = vmatmul.f32.gmra.mxu0 %v3504_v13 }
 0x6a0   : > { %1807 = vmatmul.f32.gmra.mxu0 %v3509_v29 }
 0x6a8   : > { %1810 = vmatmul.f32.gmra.mxu0 %v3514_v62 }
 0x6ad   : > { %v1766_v61 = vpop.f32.mrf.mxu0 }
 0x6ae   : > { %1833 = vmatmul.f32.vlgmr.msrb.gmra.mxu1 %v1766_v61 }
 0x6b5   : > { %v1769_v3 = vpop.f32.mrf.mxu0 }
 0x6b6   : > { %1836 = vmatmul.f32.gmra.mxu1 %v1769_v3 }
 0x6bd   : > { %v1772_v48 = vpop.f32.mrf.mxu0 }
 0x6be   : > { %1839 = vmatmul.f32.gmra.mxu1 %v1772_v48 }
 0x6c5   : > { %v1775_v7 = vpop.f32.mrf.mxu0 }
 0x6c6   : > { %1842 = vmatmul.f32.gmra.mxu1 %v1775_v7 }
 0x6cd   : > { %v1778_v45 = vpop.f32.mrf.mxu0 }
 0x6ce   : > { %1845 = vmatmul.f32.gmra.mxu1 %v1778_v45 }
 0x6d5   : > { %v1781_v52 = vpop.f32.mrf.mxu0 }
 0x6d6   : > { %1848 = vmatmul.f32.gmra.mxu1 %v1781_v52 }
 0x6dd   : > { %v1784_v59 = vpop.f32.mrf.mxu0 }
 0x6de   : > { %1851 = vmatmul.f32.gmra.mxu1 %v1784_v59 }
 0x6e5   : > { %v1787_v19 = vpop.f32.mrf.mxu0 }
 0x6e6   : > { %1854 = vmatmul.f32.gmra.mxu1 %v1787_v19 }
 0x6ed   : > { %v1790_v13 = vpop.f32.mrf.mxu0 }
 0x6ee   : > { %1857 = vmatmul.f32.gmra.mxu1 %v1790_v13 }
 0x6f5   : > { %v1793_v29 = vpop.f32.mrf.mxu0 }
 0x6f6   : > { %1860 = vmatmul.f32.gmra.mxu1 %v1793_v29 }
 0x6fd   : > { %v1796_v62 = vpop.f32.mrf.mxu0 }
 0x6fe   : > { %1863 = vmatmul.f32.gmra.mxu1 %v1796_v62 }
 0x705   : > { %v1799_v46 = vpop.f32.mrf.mxu0 }
 0x706   : > { %1866 = vmatmul.f32.gmra.mxu1 %v1799_v46 }
 0x70d   : > { %v1802_v9 = vpop.f32.mrf.mxu0 }
 0x70e   : > { %1869 = vmatmul.f32.gmra.mxu1 %v1802_v9  ;;  %v1981_v9 = vld [vmem:[%s3818_s8 + $0x60] sm:$0xff] }
 0x70f   : > { %2015 = vmatpush.msra.mxu2 %v1981_v9  ;;  %v2042_v9 = vld [vmem:[%s3820_s10 + $0x48] sm:$0xff] }
 0x715   : > { %v1805_v30 = vpop.f32.mrf.mxu0 }
 0x716   : > { %1872 = vmatmul.f32.gmra.mxu1 %v1805_v30  ;;  %v1980_v30 = vld [vmem:[%s3818_s8 + $0x58] sm:$0xff] }
 0x717   : > { %2016 = vmatpush.msra.mxu2 %v1980_v30 }
 0x71d   : > { %v1808_v22 = vpop.f32.mrf.mxu0 }
 0x71e   : > { %1875 = vmatmul.f32.gmra.mxu1 %v1808_v22 }
 0x725   : > { %v1811_v18 = vpop.f32.mrf.mxu0 }
 0x726   : > { %1878 = vmatmul.f32.gmra.mxu1 %v1811_v18 }
 0x72b   : > { %v1834_v42 = vpop.f32.mrf.mxu1 }
 0x72c   : > { %v1835_v23 = vadd.f32 %v3648_v26, %v1834_v42 }
 0x72e   : > { %v1882_v63 = vmax.f32 %v1835_v23, 0.0 }
 0x733   : > { %v1837_v37 = vpop.f32.mrf.mxu1 }
 0x734   : > { %v1838_v41 = vadd.f32 %v3648_v26, %v1837_v37 }
 0x736   : > { %v1883_v2 = vmax.f32 %v1838_v41, 0.0 }
 0x738   : > { %v1898_v4 = vadd.f32 %v1883_v2, %v1882_v63 }
 0x73a   : > { %v1899_v27 = vrot.slane %v1898_v4, 4 }
 0x73b   : > { %v1840_v21 = vpop.f32.mrf.mxu1 }
 0x73c   : > { %v1900_v11 = vadd.f32 %v1899_v27, %v1898_v4  ;;  %v1841_v56 = vadd.f32 %v3648_v26, %v1840_v21  ;;  %v1979_v27 = vld [vmem:[%s3818_s8 + $0x50] sm:$0xff] }
 0x73d   : > { %2017 = vmatpush.msra.mxu2 %v1979_v27 }
 0x73e   : > { %v1901_v47 = vrot.slane %v1900_v11, 2  ;;  %v1884_v14 = vmax.f32 %v1841_v56, 0.0 }
 0x73f   : > { %2018 = vmatpush.msra.mxu2 %v1978_v8  ;;  %v2038_v8 = vld [vmem:[%s3820_s10 + $0x28] sm:$0xff] }
 0x740   : > { %v1902_v15 = vadd.f32 %v1901_v47, %v1900_v11 }
 0x742   : > { %v1903_v34 = vrot.slane %v1902_v15, 1 }
 0x743   : > { %v1843_v40 = vpop.f32.mrf.mxu1 }
 0x744   : > { %v1844_v12 = vadd.f32 %v3648_v26, %v1843_v40  ;;  %v1904_v53 = vadd.f32 %v1903_v34, %v1902_v15  ;;  %v1977_v40 = vld [vmem:[%s3818_s8 + $0x40] sm:$0xff]  ;;  %v1974_v15 = vld [vmem:[%s3818_s8 + $0x28] sm:$0xff] }
 0x745   : > { %2019 = vmatpush.msra.mxu2 %v1977_v40  ;;  %v2037_v40 = vld [vmem:[%s3820_s10 + $0x20] sm:$0xff] }
 0x746   : > { %v1885_v5 = vmax.f32 %v1844_v12, 0.0  ;;  %v1961_v55 = vmul.f32 %v3658_v1, %v1904_v53  ;;  %v1976_v12 = vld [vmem:[%s3818_s8 + $0x38] sm:$0xff] }
 0x747   : > { %2020 = vmatpush.msra.mxu2 %v1976_v12  ;;  %v1972_v53 = vld [vmem:[%s3818_s8 + $0x18] sm:$0xff] }
 0x748   : > { %v1905_v38 = vadd.f32 %v1885_v5, %v1884_v14 }
 0x749   : > { %2021 = vmatpush.msra.mxu2 %v1975_v57 }
 0x74a   : > { %v1906_v20 = vrot.slane %v1905_v38, 4 }
 0x74b   : > { %v1846_v31 = vpop.f32.mrf.mxu1  ;;  %2022 = vmatpush.msra.mxu2 %v1974_v15 }
 0x74c   : > { %v1907_v36 = vadd.f32 %v1906_v20, %v1905_v38  ;;  %v1847_v32 = vadd.f32 %v3648_v26, %v1846_v31 }
 0x74e   : > { %v1908_v17 = vrot.slane %v1907_v36, 2  ;;  %v1886_v24 = vmax.f32 %v1847_v32, 0.0 }
 0x750   : > { %v1909_v58 = vadd.f32 %v1908_v17, %v1907_v36  ;;  %v1973_v36 = vld [vmem:[%s3818_s8 + $0x20] sm:$0xff] }
 0x751   : > { %2023 = vmatpush.msra.mxu2 %v1973_v36 }
 0x752   : > { %v1910_v25 = vrot.slane %v1909_v58, 1 }
 0x753   : > { %v1849_v50 = vpop.f32.mrf.mxu1  ;;  %2024 = vmatpush.msra.mxu2 %v1972_v53  ;;  %v2034_v53 = vld [vmem:[%s3820_s10 + $0x8] sm:$0xff] }
 0x754   : > { %v1911_v54 = vadd.f32 %v1910_v25, %v1909_v58  ;;  %v1850_v51 = vadd.f32 %v3648_v26, %v1849_v50  ;;  %v1971_v25 = vld [vmem:[%s3818_s8 + $0x10] sm:$0xff] }
 0x755   : > { %2025 = vmatpush.msra.mxu2 %v1971_v25 }
 0x756   : > { %v1962_v0 = vmul.f32 %v3658_v1, %v1911_v54  ;;  %v1887_v35 = vmax.f32 %v1850_v51, 0.0 }
 0x758   : > { %v1998_v44 = vsel %vm1997_vm2, %v1962_v0, %v1961_v55  ;;  %v1912_v6 = vadd.f32 %v1887_v35, %v1886_v24  ;;  %v1970_v55 = vld [vmem:[%s3818_s8 + $0x8] sm:$0xff]  ;;  %v1969_v24 = vld [vmem:[%s3818_s8] sm:$0xff] }
 0x759   : > { %2026 = vmatpush.msra.mxu2 %v1970_v55 }
 0x75a   : > { %v1913_v16 = vrot.slane %v1912_v6, 4 }
 0x75b   : > { %v1852_v61 = vpop.f32.mrf.mxu1  ;;  %2027 = vmatpush.msra.mxu2 %v1969_v24 }
 0x75c   : > { %v1914_v3 = vadd.f32 %v1913_v16, %v1912_v6  ;;  %v1853_v52 = vadd.f32 %v3648_v26, %v1852_v61  ;;  %v2046_v61 = vld [vmem:[%s3820_s10 + $0x68] sm:$0xff] }
 0x75d   : > { %2055 = vmatpush.msra.mxu3 %v2046_v61 }
 0x75e   : > { %v1915_v48 = vrot.slane %v1914_v3, 2  ;;  %v1888_v62 = vmax.f32 %v1853_v52, 0.0  ;;  %v2044_v52 = vld [vmem:[%s3820_s10 + $0x58] sm:$0xff] }
 0x760   : > { %v1916_v7 = vadd.f32 %v1915_v48, %v1914_v3  ;;  %v2045_v48 = vld [vmem:[%s3820_s10 + $0x60] sm:$0xff] }
 0x761   : > { %2056 = vmatpush.msra.mxu3 %v2045_v48 }
 0x762   : > { %v1917_v45 = vrot.slane %v1916_v7, 1 }
 0x763   : > { %v1855_v59 = vpop.f32.mrf.mxu1  ;;  %2057 = vmatpush.msra.mxu3 %v2044_v52 }
 0x764   : > { %v1918_v19 = vadd.f32 %v1917_v45, %v1916_v7  ;;  %v1856_v13 = vadd.f32 %v3648_v26, %v1855_v59 }
 0x766   : > { %v1963_v29 = vmul.f32 %v3658_v1, %v1918_v19  ;;  %v1889_v46 = vmax.f32 %v1856_v13, 0.0  ;;  %v2043_v19 = vld [vmem:[%s3820_s10 + $0x50] sm:$0xff] }
 0x767   : > { %2058 = vmatpush.msra.mxu3 %v2043_v19 }
 0x768   : > { %v1919_v22 = vadd.f32 %v1889_v46, %v1888_v62  ;;  %v2000_v18 = vsel %vm1999_vm3, %v1963_v29, %v1998_v44 }
 0x769   : > { %2059 = vmatpush.msra.mxu3 %v2042_v9 }
 0x76a   : > { %v1920_v42 = vrot.slane %v1919_v22, 4 }
 0x76b   : > { %v1858_v23 = vpop.f32.mrf.mxu1 }
 0x76c   : > { %v1921_v37 = vadd.f32 %v1920_v42, %v1919_v22  ;;  %v1859_v49 = vadd.f32 %v3648_v26, %v1858_v23 }
 0x76e   : > { %v1922_v41 = vrot.slane %v1921_v37, 2  ;;  %v1890_v34 = vmax.f32 %v1859_v49, 0.0 }
 0x770   : > { %v1923_v63 = vadd.f32 %v1922_v41, %v1921_v37 }
 0x772   : > { %v1924_v2 = vrot.slane %v1923_v63, 1 }
 0x773   : > { %v1861_v4 = vpop.f32.mrf.mxu1 }
 0x774   : > { %v1925_v28 = vadd.f32 %v1924_v2, %v1923_v63  ;;  %v1862_v14 = vadd.f32 %v3648_v26, %v1861_v4  ;;  %v2040_v63 = vld [vmem:[%s3820_s10 + $0x38] sm:$0xff] }
 0x776   : > { %v1964_v21 = vmul.f32 %v3658_v1, %v1925_v28  ;;  %v1891_v20 = vmax.f32 %v1862_v14, 0.0 }
 0x778   : > { %v3685_v11 = vsel %vm2001_vm4, %v1964_v21, %v2000_v18  ;;  %v1926_v32 = vadd.f32 %v1891_v20, %v1890_v34  ;;  %v2041_v18 = vld [vmem:[%s3820_s10 + $0x40] sm:$0xff] }
 0x779   : > { %2060 = vmatpush.msra.mxu3 %v2041_v18 }
 0x77a   : > { %v1927_v35 = vrot.slane %v1926_v32, 4 }
 0x77b   : > { %v1864_v56 = vpop.f32.mrf.mxu1  ;;  %2061 = vmatpush.msra.mxu3 %v2040_v63 }
 0x77c   : > { %v1865_v38 = vadd.f32 %v3648_v26, %v1864_v56  ;;  %v1928_v3 = vadd.f32 %v1927_v35, %v1926_v32 }
 0x77e   : > { %v1892_v60 = vmax.f32 %v1865_v38, 0.0  ;;  %v1929_v59 = vrot.slane %v1928_v3, 2 }
 0x780   : > { %v1930_v22 = vadd.f32 %v1929_v59, %v1928_v3 }
 0x782   : > { %v1931_v4 = vrot.slane %v1930_v22, 1 }
 0x783   : > { %v1867_v39 = vpop.f32.mrf.mxu1 }
 0x784   : > { %v1868_v5 = vadd.f32 %v3648_v26, %v1867_v39  ;;  %v1932_v39 = vadd.f32 %v1931_v4, %v1930_v22 }
 0x786   : > { %v1893_v33 = vmax.f32 %v1868_v5, 0.0  ;;  %v2036_v5 = vld [vmem:[%s3820_s10 + $0x18] sm:$0xff]  ;;  %v1965_v49 = vmul.f32 %v3658_v1, %v1932_v39 }
 0x788   : > { %v1933_v50 = vadd.f32 %v1893_v33, %v1892_v60 }
 0x78a   : > { %v1934_v44 = vrot.slane %v1933_v50, 4 }
 0x78b   : > { %v1870_v47 = vpop.f32.mrf.mxu1 }
 0x78c   : > { %v1871_v31 = vadd.f32 %v3648_v26, %v1870_v47  ;;  %v1935_v7 = vadd.f32 %v1934_v44, %v1933_v50 }
 0x78e   : > { %v1894_v54 = vmax.f32 %v1871_v31, 0.0  ;;  %v1936_v13 = vrot.slane %v1935_v7, 2  ;;  %v2004_v31 = vsel %vm2003_vm5, %v1965_v49, %v3685_v11  ;;  %v2033_v11 = vld [vmem:[%s3820_s10] sm:$0xff] }
 0x790   : > { %v1937_v42 = vadd.f32 %v1936_v13, %v1935_v7 }
 0x792   : > { %v1938_v28 = vrot.slane %v1937_v42, 1 }
 0x793   : > { %v1873_v17 = vpop.f32.mrf.mxu1 }
 0x794   : > { %v1874_v58 = vadd.f32 %v3648_v26, %v1873_v17  ;;  %v1939_v12 = vadd.f32 %v1938_v28, %v1937_v42 }
 0x796   : > { %v1895_v51 = vmax.f32 %v1874_v58, 0.0  ;;  %v1966_v38 = vmul.f32 %v3658_v1, %v1939_v12  ;;  %v2035_v58 = vld [vmem:[%s3820_s10 + $0x10] sm:$0xff] }
 0x798   : > { %v1940_v0 = vadd.f32 %v1895_v51, %v1894_v54  ;;  %v2006_v34 = vsel %vm2005_vm6, %v1966_v38, %v2004_v31  ;;  %v2369_v54 = vld [vmem:[%s3821_s11] ss:$0 sm:$0xff] }
 0x79a   : > { %v1941_v6 = vrot.slane %v1940_v0, 4 }
 0x79b   : > { %v1876_v16 = vpop.f32.mrf.mxu1 }
 0x79c   : > { %v1942_v45 = vadd.f32 %v1941_v6, %v1940_v0  ;;  %v1877_v29 = vadd.f32 %v3648_v26, %v1876_v16 }
 0x79e   : > { %v1943_v62 = vrot.slane %v1942_v45, 2  ;;  %v1896_v23 = vmax.f32 %v1877_v29, 0.0 }
 0x7a0   : > { %v1944_v41 = vadd.f32 %v1943_v62, %v1942_v45 }
 0x7a2   : > { %v1945_v27 = vrot.slane %v1944_v41, 1 }
 0x7a3   : > { %v1879_v46 = vpop.f32.mrf.mxu1 }
 0x7a4   : > { %v1880_v30 = vadd.f32 %v3648_v26, %v1879_v46  ;;  %v2039_v26 = vld [vmem:[%s3820_s10 + $0x30] sm:$0xff]  ;;  %v1946_v14 = vadd.f32 %v1945_v27, %v1944_v41 }
 0x7a5   : > { %2062 = vmatpush.msra.mxu3 %v2039_v26 }
 0x7a6   : > { %v1897_v37 = vmax.f32 %v1880_v30, 0.0  ;;  %v1967_v20 = vmul.f32 %v3658_v1, %v1946_v14 }
 0x7a7   : > { %2063 = vmatpush.msra.mxu3 %v2038_v8 }
 0x7a8   : > { %v1947_v2 = vadd.f32 %v1897_v37, %v1896_v23  ;;  %v2008_v17 = vsel %vm2007_vm11, %v1967_v20, %v2006_v34 }
 0x7a9   : > { %2064 = vmatpush.msra.mxu3 %v2037_v40 }
 0x7aa   : > { %v1948_v21 = vrot.slane %v1947_v2, 4 }
 0x7ab   : > { %2065 = vmatpush.msra.mxu3 %v2036_v5 }
 0x7ac   : > { %v1949_v56 = vadd.f32 %v1948_v21, %v1947_v2 }
 0x7ad   : > { %2066 = vmatpush.msra.mxu3 %v2035_v58 }
 0x7ae   : > { %v1950_v47 = vrot.slane %v1949_v56, 2 }
 0x7af   : > { %2067 = vmatpush.msra.mxu3 %v2034_v53 }
 0x7b0   : > { %v1951_v57 = vadd.f32 %v1950_v47, %v1949_v56 }
 0x7b1   : > { %2068 = vmatpush.msra.mxu3 %v2033_v11 }
 0x7b2   : > { %v1952_v15 = vrot.slane %v1951_v57, 1 }
 0x7b4   : > { %v1953_v33 = vadd.f32 %v1952_v15, %v1951_v57 }
 0x7b6   : > { %v1968_v36 = vmul.f32 %v3658_v1, %v1953_v33  ;;  %v2368_v1 = vld [vmem:[#allocation7] ss:$0 sm:$0xff] }
 0x7b8   : > { %v2010_v60 = vsel %vm2009_vm12, %v1968_v36, %v2008_v17 }
 0x7b9   : > { %2028 = vmatmul.f32.vlgmr.msra.gmra.mxu2 %v2010_v60 }
 0x83c   : > { %v2029_v25 = vpop.f32.mrf.mxu2 }
 0x83d   : > { %v2030_v32 = vadd.f32 %v2368_v1, %v2029_v25 }
 0x83f   : > { %v2032_v50 = vmax.f32 %v2030_v32, 0.0 }
 0x841   : > { %2069 = vmatmul.f32.vlgmr.msra.gmra.mxu3 %v2032_v50 }
 0x8c4   : > { %v2070_v51 = vpop.f32.mrf.mxu3 }
 0x8c5   : > { %v2071_v55 = vadd.f32 %v2369_v54, %v2070_v51 }
 0x8c7   : > { %2073 = vst [vmem:[%s471_s7] sm:$0xff] %v2071_v55 }
 0x8c8   : > { %2521 = shalt.err (!%p2518_p8)
}
 0x8c9   : > { %2291 = dma.vmem_to_hbm [thread:$0]  (%p2688_p5), %s2088_s27, 128, %s2090_s18, %s2075_s25  }
 0x8ca PF: > { %p2313_p9 = scmp.ge.s32.totalorder %s2564_s24, 2  ;;  %s2101_s28 = sand.u32 1, %s2552_s21  }
 0x8cb   : > { %s2102_s19 = scalar_lea.sflag [#allocation4], %s2101_s28 }
 0x8cc   : > { %p2304_p10 = pnand %p2313_p9, %p2692_p6 }
 0x8ce   : > { %p2305_p11 = pneg %p2304_p10 }
 0x8d0   : > { %2547 = dma.done.wait (%p2305_p11), %s2102_s19, 128  }
 0x8d1   : > { %2549 = vsyncadd (%p2305_p11), %s2102_s19, 4294967168  ;;  %s3834_s24 = sld [smem:[#allocation13_spill]]  ;;  %s3837_s21 = smov %s2556_s22 }
 0x8d2   : > { %s3835_s15 = sld [smem:[#allocation12_spill]] }
 0x8d3   : > { %s3836_s23 = sld [smem:[#allocation14_spill]] }
 0x8d7   : > { %p24_p12 = scmp.ge.s32.totalorder %s3834_s24, 4  }
 0x8d8   : > { %s3838_s22 = smov %s3835_s15 }
 0x8d9   :  { %26 = sbr.rel (!%p24_p12) target bundleno = 7 (0x7), region = 119 }
 0x8de   :  { %2108 = vsyncpa [#allocation3], 1 }
 0x8df   :  { %2110 = vsyncpa [#allocation3 + $0x1], 1 }
 0x8e0   :  { %2111 = vsyncpa [#allocation6], 1 }
 0x8e1   :  { %2112 = vsyncpa [#allocation4], 1 }
 0x8e2   :  { %2114 = vsyncpa [#allocation4 + $0x1], 1 }

</bundles_post_ra>
